<compile_context>
chip_gen: v7x
topology: tpu7x:2x2x1
jax: 0.10.0
libtpu: 0.0.40
codegen_flags: <defaults>
</compile_context>

<pallas_src>
import jax
import jax.numpy as jnp
from jax.experimental import pallas as pl
from jax.experimental.pallas import tpu as pltpu

LN_EPS = 1e-5


def _patch_merging_kernel(x01_ref, x23_ref, gamma_ref, beta_ref, w_ref,
                          bias_ref, o_ref):
    # x01_ref, x23_ref: (tR, W/2, 2C)  even / odd image rows = [x0|x1], [x2|x3]
    # gamma_ref/beta_ref: (1, 4C) f32  LayerNorm affine (pre-cast in wrapper)
    # w_ref:              (4C, 2C) bf16 reduction weight (x @ W layout)
    # bias_ref:           (1, 2C)  f32
    # o_ref:              (tR, W/2, 2C)
    tr, w2, cc = x01_ref.shape
    c4 = 2 * cc
    c_out = w_ref.shape[1]
    rows = tr * w2

    x01 = x01_ref[...].astype(jnp.float32)
    x23 = x23_ref[...].astype(jnp.float32)
    xc = jnp.concatenate([x01, x23], axis=-1)        # (tR, W/2, 4C) = [x0|x1|x2|x3]
    xc = xc.reshape(rows, c4)                        # lane dim unchanged (cheap)

    # LayerNorm over the channel (lane) axis, biased variance like torch.
    mean = jnp.mean(xc, axis=-1, keepdims=True)
    centered = xc - mean
    var = jnp.mean(centered * centered, axis=-1, keepdims=True)
    xn = centered * jax.lax.rsqrt(var + LN_EPS)
    xn = xn * gamma_ref[...] + beta_ref[...]

    # Reduction: (rows, 4C) @ (4C, 2C) on the MXU, bf16 inputs / f32 accumulate.
    y = jnp.dot(xn.astype(w_ref.dtype), w_ref[...],
                preferred_element_type=jnp.float32)
    y = y + bias_ref[...]
    o_ref[...] = y.reshape(tr, w2, c_out).astype(o_ref.dtype)


def _row_tile_and_vmem_limit(n_rows, w2, c, in_itemsize, out_itemsize,
                             target_rows=512, budget=48 * 1024 * 1024):
    """Pick the tile along the fused (B*H/2) axis + a matching VMEM limit."""
    cc, c4, c_out = 2 * c, 4 * c, 2 * c

    def estimate(t):
        rows = t * w2
        tile = (2 * 2 * rows * cc * in_itemsize       # 2 inputs, double-buffered
                + 2 * rows * c_out * out_itemsize)    # output, double-buffered
        temps = 4 * rows * c4 * 4                     # f32 LN / matmul temporaries
        return tile + temps

    if n_rows <= 8:
        t_r = n_rows
    else:
        t_r = max(8, ((-(-target_rows // w2) + 7) // 8) * 8)
        t_r = min(t_r, ((n_rows + 7) // 8) * 8)
        if t_r >= n_rows:                 # keep >=2 grid steps (v7x has 2 cores)
            t_r = max(8, ((-(-n_rows // 2) + 7) // 8) * 8)
        while t_r > 8 and estimate(t_r) > budget:
            t_r = max(8, ((t_r // 2) // 8) * 8)

    const_bytes = c4 * c_out * 2 + (2 * c4 + c_out) * 4   # bf16 W + f32 LN params
    limit = int(1.2 * (estimate(t_r) + const_bytes)) + (1 << 20)
    limit = max(32 * 1024 * 1024, min(limit, 60 * 1024 * 1024))
    return t_r, limit


def patch_merging(x, resolution, gamma, beta, w, bias):
    """x: (B, H*W, C) -> (B, H/2 * W/2, 2C). Matches PatchMerging.forward."""
    h, w_res = resolution
    b, l, c = x.shape
    assert l == h * w_res and h % 2 == 0 and w_res % 2 == 0
    h2, w2 = h // 2, w_res // 2
    cc, c4, c_out = 2 * c, 4 * c, 2 * c
    n_rows = b * h2                                   # fused (batch, H/2) axis

    # Free row-major view: (B, H, W, C) == (B*H/2, 2, W/2, 2C).
    # For a fixed (row, w2), the 2C channels are [wp=0 | wp=1], i.e. [x0|x1]
    # on even image rows (hp=0) and [x2|x3] on odd image rows (hp=1).
    xv = x.reshape(n_rows, 2, w2, cc)

    w_bf16 = w.astype(jnp.bfloat16)                   # MXU-native operand
    gamma2 = gamma.reshape(1, c4).astype(jnp.float32)
    beta2 = beta.reshape(1, c4).astype(jnp.float32)
    bias2 = bias.reshape(1, c_out).astype(jnp.float32)

    t_r, vmem_limit = _row_tile_and_vmem_limit(
        n_rows, w2, c, x.dtype.itemsize, x.dtype.itemsize)
    grid = (pl.cdiv(n_rows, t_r),)

    def build(single_buffer_consts):
        const_kw = ({"pipeline_mode": pl.Buffered(1)}
                    if single_buffer_consts else {})
        in_specs = [
            pl.BlockSpec((t_r, None, w2, cc), lambda i: (i, 0, 0, 0)),  # [x0|x1]
            pl.BlockSpec((t_r, None, w2, cc), lambda i: (i, 1, 0, 0)),  # [x2|x3]
            pl.BlockSpec((1, c4), lambda i: (0, 0), **const_kw),        # gamma
            pl.BlockSpec((1, c4), lambda i: (0, 0), **const_kw),        # beta
            pl.BlockSpec((c4, c_out), lambda i: (0, 0), **const_kw),    # weight
            pl.BlockSpec((1, c_out), lambda i: (0, 0), **const_kw),     # bias
        ]
        out_specs = pl.BlockSpec((t_r, w2, c_out), lambda i: (i, 0, 0))
        return pl.pallas_call(
            _patch_merging_kernel,
            out_shape=jax.ShapeDtypeStruct((n_rows, w2, c_out), x.dtype),
            grid_spec=pltpu.PrefetchScalarGridSpec(
                num_scalar_prefetch=0,
                grid=grid,
                in_specs=in_specs,
                out_specs=out_specs,
            ),
            compiler_params=pltpu.CompilerParams(
                dimension_semantics=("parallel",),
                vmem_limit_bytes=vmem_limit,
            ),
        )

    try:
        out3d = build(True)(xv, xv, gamma2, beta2, w_bf16, bias2)
    except Exception:   # fall back if Buffered(1) single-buffering is rejected
        out3d = build(False)(xv, xv, gamma2, beta2, w_bf16, bias2)

    return out3d.reshape(b, l // 4, c_out)


def _reference(x, resolution, gamma, beta, w, bias):
    # Pure-JAX reference with the same numerics (f32 LN, bf16 matmul, f32 acc).
    h, w_res = resolution
    b, l, c = x.shape
    xg = x.reshape(b, h, w_res, c)
    x0 = xg[:, 0::2, 0::2, :].reshape(b, -1, c)
    x1 = xg[:, 0::2, 1::2, :].reshape(b, -1, c)
    x2 = xg[:, 1::2, 0::2, :].reshape(b, -1, c)
    x3 = xg[:, 1::2, 1::2, :].reshape(b, -1, c)
    xc = jnp.concatenate([x0, x1, x2, x3], axis=-1).astype(jnp.float32)
    mean = jnp.mean(xc, axis=-1, keepdims=True)
    var = jnp.mean((xc - mean) ** 2, axis=-1, keepdims=True)
    xn = (xc - mean) * jax.lax.rsqrt(var + LN_EPS) * gamma + beta
    y = jnp.dot(xn.astype(jnp.bfloat16), w.astype(jnp.bfloat16),
                preferred_element_type=jnp.float32) + bias
    return y.astype(x.dtype)


if __name__ == "__main__":
    # Small shapes: B=2, H=W=16, C=32  ->  x: (2, 256, 32), out: (2, 64, 64)
    B, H, W, C = 2, 16, 16, 32
    key = jax.random.PRNGKey(0)
    kx, kg, kb, kw, kbias = jax.random.split(key, 5)

    x = jax.random.normal(kx, (B, H * W, C), dtype=jnp.float32)

    # Deterministic synthetic parameters (nn.LayerNorm / nn.Linear shapes).
    gamma = 1.0 + 0.02 * jax.random.normal(kg, (4 * C,), dtype=jnp.float32)
    beta = 0.02 * jax.random.normal(kb, (4 * C,), dtype=jnp.float32)
    # torch Linear weight is (2C, 4C); we store its transpose (4C, 2C) for x @ W.
    w = 0.05 * jax.random.normal(kw, (4 * C, 2 * C), dtype=jnp.float32)
    bias = 0.01 * jax.random.normal(kbias, (2 * C,), dtype=jnp.float32)

    out = patch_merging(x, (H, W), gamma, beta, w, bias)
    out = jax.block_until_ready(out)

    ref = _reference(x, (H, W), gamma, beta, w, bias)
    assert out.shape == (B, (H // 2) * (W // 2), 2 * C)
    max_err = float(jnp.max(jnp.abs(out - ref)))
    assert jnp.allclose(out, ref, atol=1e-2, rtol=1e-2), max_err

    print("KERNEL_OK")
</pallas_src>

<mosaic_0001>
module attributes {stable_mosaic.version = 11 : i64} {
  func.func @_patch_merging_kernel(%arg0: i32, %arg1: memref<8x1x8x64xf32, #tpu.memory_space<vmem>>, %arg2: memref<8x1x8x64xf32, #tpu.memory_space<vmem>>, %arg3: memref<1x128xf32, #tpu.memory_space<vmem>>, %arg4: memref<1x128xf32, #tpu.memory_space<vmem>>, %arg5: memref<128x64xbf16, #tpu.memory_space<vmem>>, %arg6: memref<1x64xf32, #tpu.memory_space<vmem>>, %arg7: memref<8x8x64xf32, #tpu.memory_space<vmem>>) attributes {dimension_semantics = [#tpu.dimension_semantics<parallel>], iteration_bounds = array<i64: 2>, scalar_prefetch = 0 : i64, scratch_operands = 0 : i64, tpu.core_type = #tpu.core_type<tc>, window_params = [{transform_indices = @transform_0, window_bounds = array<i64: 8, 1, 8, 64>}, {transform_indices = @transform_1, window_bounds = array<i64: 8, 1, 8, 64>}, {pipeline_mode = #tpu.pipeline_mode<synchronous>, transform_indices = @transform_2, window_bounds = array<i64: 1, 128>}, {pipeline_mode = #tpu.pipeline_mode<synchronous>, transform_indices = @transform_3, window_bounds = array<i64: 1, 128>}, {pipeline_mode = #tpu.pipeline_mode<synchronous>, transform_indices = @transform_4, window_bounds = array<i64: 128, 64>}, {pipeline_mode = #tpu.pipeline_mode<synchronous>, transform_indices = @transform_5, window_bounds = array<i64: 1, 64>}, {transform_indices = @transform_6, window_bounds = array<i64: 8, 8, 64>}]} {
    %c0 = arith.constant 0 : index
    %c0_0 = arith.constant 0 : index
    %c0_1 = arith.constant 0 : index
    %c0_2 = arith.constant 0 : index
    %0 = vector.load %arg1[%c0, %c0_0, %c0_1, %c0_2] : memref<8x1x8x64xf32, #tpu.memory_space<vmem>>, vector<8x1x8x64xf32>
    %1 = vector.shape_cast %0 : vector<8x1x8x64xf32> to vector<8x8x64xf32>
    %c0_3 = arith.constant 0 : index
    %c0_4 = arith.constant 0 : index
    %c0_5 = arith.constant 0 : index
    %c0_6 = arith.constant 0 : index
    %2 = vector.load %arg2[%c0_3, %c0_4, %c0_5, %c0_6] : memref<8x1x8x64xf32, #tpu.memory_space<vmem>>, vector<8x1x8x64xf32>
    %3 = vector.shape_cast %2 : vector<8x1x8x64xf32> to vector<8x8x64xf32>
    %4 = tpu.concatenate %1, %3 in 2 : vector<8x8x64xf32>, vector<8x8x64xf32> -> vector<8x8x128xf32>
    %5 = vector.shape_cast %4 : vector<8x8x128xf32> to vector<64x128xf32>
    %cst = arith.constant dense<0.000000e+00> : vector<64xf32>
    %6 = vector.multi_reduction <add>, %5, %cst [1] : vector<64x128xf32> to vector<64xf32>
    %7 = vector.shape_cast %6 : vector<64xf32> to vector<64x1xf32>
    %cst_7 = arith.constant 1.280000e+02 : f32
    %8 = vector.broadcast %cst_7 : f32 to vector<64x1xf32>
    %9 = arith.divf %7, %8 : vector<64x1xf32>
    %10 = vector.broadcast %9 : vector<64x1xf32> to vector<64x128xf32>
    %11 = arith.subf %5, %10 : vector<64x128xf32>
    %12 = arith.mulf %11, %11 : vector<64x128xf32>
    %cst_8 = arith.constant dense<0.000000e+00> : vector<64xf32>
    %13 = vector.multi_reduction <add>, %12, %cst_8 [1] : vector<64x128xf32> to vector<64xf32>
    %14 = vector.shape_cast %13 : vector<64xf32> to vector<64x1xf32>
    %cst_9 = arith.constant 1.280000e+02 : f32
    %15 = vector.broadcast %cst_9 : f32 to vector<64x1xf32>
    %16 = arith.divf %14, %15 : vector<64x1xf32>
    %cst_10 = arith.constant 9.99999974E-6 : f32
    %17 = vector.broadcast %cst_10 : f32 to vector<64x1xf32>
    %18 = arith.addf %16, %17 : vector<64x1xf32>
    %19 = math.rsqrt %18 : vector<64x1xf32>
    %20 = vector.broadcast %19 : vector<64x1xf32> to vector<64x128xf32>
    %21 = arith.mulf %11, %20 : vector<64x128xf32>
    %c0_11 = arith.constant 0 : index
    %c0_12 = arith.constant 0 : index
    %22 = vector.load %arg3[%c0_11, %c0_12] : memref<1x128xf32, #tpu.memory_space<vmem>>, vector<1x128xf32>
    %23 = vector.broadcast %22 : vector<1x128xf32> to vector<64x128xf32>
    %24 = arith.mulf %21, %23 : vector<64x128xf32>
    %c0_13 = arith.constant 0 : index
    %c0_14 = arith.constant 0 : index
    %25 = vector.load %arg4[%c0_13, %c0_14] : memref<1x128xf32, #tpu.memory_space<vmem>>, vector<1x128xf32>
    %26 = vector.broadcast %25 : vector<1x128xf32> to vector<64x128xf32>
    %27 = arith.addf %24, %26 : vector<64x128xf32>
    %28 = arith.truncf %27 : vector<64x128xf32> to vector<64x128xbf16>
    %c0_15 = arith.constant 0 : index
    %c0_16 = arith.constant 0 : index
    %29 = vector.load %arg5[%c0_15, %c0_16] : memref<128x64xbf16, #tpu.memory_space<vmem>>, vector<128x64xbf16>
    %cst_17 = arith.constant dense<0.000000e+00> : vector<64x64xf32>
    %30 = tpu.matmul %28, %29, %cst_17 {dimension_numbers = #tpu.dot_dimension_numbers<[1], [0], [0], [1], [0, 0, 1, 1], [], []>} : vector<64x128xbf16>, vector<128x64xbf16>, vector<64x64xf32> -> vector<64x64xf32>
    %c0_18 = arith.constant 0 : index
    %c0_19 = arith.constant 0 : index
    %31 = vector.load %arg6[%c0_18, %c0_19] : memref<1x64xf32, #tpu.memory_space<vmem>>, vector<1x64xf32>
    %32 = vector.broadcast %31 : vector<1x64xf32> to vector<64x64xf32>
    %33 = arith.addf %30, %32 : vector<64x64xf32>
    %34 = vector.shape_cast %33 : vector<64x64xf32> to vector<8x8x64xf32>
    %c0_20 = arith.constant 0 : index
    %c0_21 = arith.constant 0 : index
    %c0_22 = arith.constant 0 : index
    %35 = vector.load %arg7[%c0_20, %c0_21, %c0_22] : memref<8x8x64xf32, #tpu.memory_space<vmem>>, vector<8x8x64xf32>
    tpu.vector_store %arg7[%c0_20, %c0_21, %c0_22], %34 {strides = array<i32>} : memref<8x8x64xf32, #tpu.memory_space<vmem>>, vector<8x8x64xf32>,
    return
  }
  func.func @transform_0(%arg0: i32) -> (i32, i32, i32, i32) {
    %c0_i32 = arith.constant 0 : i32
    %c0_i32_0 = arith.constant 0 : i32
    %c0_i32_1 = arith.constant 0 : i32
    %c0_i32_2 = arith.constant 0 : i32
    return %arg0, %c0_i32, %c0_i32_0, %c0_i32_1 : i32, i32, i32, i32
  }
  func.func @transform_1(%arg0: i32) -> (i32, i32, i32, i32) {
    %c1_i32 = arith.constant 1 : i32
    %c0_i32 = arith.constant 0 : i32
    %c0_i32_0 = arith.constant 0 : i32
    %c0_i32_1 = arith.constant 0 : i32
    return %arg0, %c1_i32, %c0_i32, %c0_i32_0 : i32, i32, i32, i32
  }
  func.func @transform_2(%arg0: i32) -> (i32, i32) {
    %c0_i32 = arith.constant 0 : i32
    %c0_i32_0 = arith.constant 0 : i32
    %c0_i32_1 = arith.constant 0 : i32
    return %c0_i32, %c0_i32_0 : i32, i32
  }
  func.func @transform_3(%arg0: i32) -> (i32, i32) {
    %c0_i32 = arith.constant 0 : i32
    %c0_i32_0 = arith.constant 0 : i32
    %c0_i32_1 = arith.constant 0 : i32
    return %c0_i32, %c0_i32_0 : i32, i32
  }
  func.func @transform_4(%arg0: i32) -> (i32, i32) {
    %c0_i32 = arith.constant 0 : i32
    %c0_i32_0 = arith.constant 0 : i32
    %c0_i32_1 = arith.constant 0 : i32
    return %c0_i32, %c0_i32_0 : i32, i32
  }
  func.func @transform_5(%arg0: i32) -> (i32, i32) {
    %c0_i32 = arith.constant 0 : i32
    %c0_i32_0 = arith.constant 0 : i32
    %c0_i32_1 = arith.constant 0 : i32
    return %c0_i32, %c0_i32_0 : i32, i32
  }
  func.func @transform_6(%arg0: i32) -> (i32, i32, i32) {
    %c0_i32 = arith.constant 0 : i32
    %c0_i32_0 = arith.constant 0 : i32
    %c0_i32_1 = arith.constant 0 : i32
    return %arg0, %c0_i32, %c0_i32_0 : i32, i32, i32
  }
}

module attributes {stable_mosaic.version = 11 : i64} {
  func.func @_patch_merging_kernel(%arg0: i32, %arg1: memref<8x1x8x64xf32, #tpu.memory_space<vmem>>, %arg2: memref<8x1x8x64xf32, #tpu.memory_space<vmem>>, %arg3: memref<1x128xf32, #tpu.memory_space<vmem>>, %arg4: memref<1x128xf32, #tpu.memory_space<vmem>>, %arg5: memref<128x64xbf16, #tpu.memory_space<vmem>>, %arg6: memref<1x64xf32, #tpu.memory_space<vmem>>, %arg7: memref<8x8x64xf32, #tpu.memory_space<vmem>>) attributes {dimension_semantics = [#tpu.dimension_semantics<parallel>], iteration_bounds = array<i64: 2>, scalar_prefetch = 0 : i64, scratch_operands = 0 : i64, tpu.core_type = #tpu.core_type<tc>, window_params = [{transform_indices = @transform_0, window_bounds = array<i64: 8, 1, 8, 64>}, {transform_indices = @transform_1, window_bounds = array<i64: 8, 1, 8, 64>}, {pipeline_mode = #tpu.pipeline_mode<synchronous>, transform_indices = @transform_2, window_bounds = array<i64: 1, 128>}, {pipeline_mode = #tpu.pipeline_mode<synchronous>, transform_indices = @transform_3, window_bounds = array<i64: 1, 128>}, {pipeline_mode = #tpu.pipeline_mode<synchronous>, transform_indices = @transform_4, window_bounds = array<i64: 128, 64>}, {pipeline_mode = #tpu.pipeline_mode<synchronous>, transform_indices = @transform_5, window_bounds = array<i64: 1, 64>}, {transform_indices = @transform_6, window_bounds = array<i64: 8, 8, 64>}]} {
    %c0 = arith.constant 0 : index
    %c0_0 = arith.constant 0 : index
    %c0_1 = arith.constant 0 : index
    %c0_2 = arith.constant 0 : index
    %0 = vector.load %arg1[%c0, %c0_0, %c0_1, %c0_2] : memref<8x1x8x64xf32, #tpu.memory_space<vmem>>, vector<8x1x8x64xf32>
    %1 = vector.shape_cast %0 : vector<8x1x8x64xf32> to vector<8x8x64xf32>
    %c0_3 = arith.constant 0 : index
    %c0_4 = arith.constant 0 : index
    %c0_5 = arith.constant 0 : index
    %c0_6 = arith.constant 0 : index
    %2 = vector.load %arg2[%c0_3, %c0_4, %c0_5, %c0_6] : memref<8x1x8x64xf32, #tpu.memory_space<vmem>>, vector<8x1x8x64xf32>
    %3 = vector.shape_cast %2 : vector<8x1x8x64xf32> to vector<8x8x64xf32>
    %4 = tpu.concatenate %1, %3 in 2 : vector<8x8x64xf32>, vector<8x8x64xf32> -> vector<8x8x128xf32>
    %5 = vector.shape_cast %4 : vector<8x8x128xf32> to vector<64x128xf32>
    %cst = arith.constant dense<0.000000e+00> : vector<64xf32>
    %6 = vector.multi_reduction <add>, %5, %cst [1] : vector<64x128xf32> to vector<64xf32>
    %7 = vector.shape_cast %6 : vector<64xf32> to vector<64x1xf32>
    %cst_7 = arith.constant 1.280000e+02 : f32
    %8 = vector.broadcast %cst_7 : f32 to vector<64x1xf32>
    %9 = arith.divf %7, %8 : vector<64x1xf32>
    %10 = vector.broadcast %9 : vector<64x1xf32> to vector<64x128xf32>
    %11 = arith.subf %5, %10 : vector<64x128xf32>
    %12 = arith.mulf %11, %11 : vector<64x128xf32>
    %cst_8 = arith.constant dense<0.000000e+00> : vector<64xf32>
    %13 = vector.multi_reduction <add>, %12, %cst_8 [1] : vector<64x128xf32> to vector<64xf32>
    %14 = vector.shape_cast %13 : vector<64xf32> to vector<64x1xf32>
    %cst_9 = arith.constant 1.280000e+02 : f32
    %15 = vector.broadcast %cst_9 : f32 to vector<64x1xf32>
    %16 = arith.divf %14, %15 : vector<64x1xf32>
    %cst_10 = arith.constant 9.99999974E-6 : f32
    %17 = vector.broadcast %cst_10 : f32 to vector<64x1xf32>
    %18 = arith.addf %16, %17 : vector<64x1xf32>
    %19 = math.rsqrt %18 : vector<64x1xf32>
    %20 = vector.broadcast %19 : vector<64x1xf32> to vector<64x128xf32>
    %21 = arith.mulf %11, %20 : vector<64x128xf32>
    %c0_11 = arith.constant 0 : index
    %c0_12 = arith.constant 0 : index
    %22 = vector.load %arg3[%c0_11, %c0_12] : memref<1x128xf32, #tpu.memory_space<vmem>>, vector<1x128xf32>
    %23 = vector.broadcast %22 : vector<1x128xf32> to vector<64x128xf32>
    %24 = arith.mulf %21, %23 : vector<64x128xf32>
    %c0_13 = arith.constant 0 : index
    %c0_14 = arith.constant 0 : index
    %25 = vector.load %arg4[%c0_13, %c0_14] : memref<1x128xf32, #tpu.memory_space<vmem>>, vector<1x128xf32>
    %26 = vector.broadcast %25 : vector<1x128xf32> to vector<64x128xf32>
    %27 = arith.addf %24, %26 : vector<64x128xf32>
    %28 = arith.truncf %27 : vector<64x128xf32> to vector<64x128xbf16>
    %c0_15 = arith.constant 0 : index
    %c0_16 = arith.constant 0 : index
    %29 = vector.load %arg5[%c0_15, %c0_16] : memref<128x64xbf16, #tpu.memory_space<vmem>>, vector<128x64xbf16>
    %cst_17 = arith.constant dense<0.000000e+00> : vector<64x64xf32>
    %30 = tpu.matmul %28, %29, %cst_17 {dimension_numbers = #tpu.dot_dimension_numbers<[1], [0], [0], [1], [0, 0, 1, 1], [], []>} : vector<64x128xbf16>, vector<128x64xbf16>, vector<64x64xf32> -> vector<64x64xf32>
    %c0_18 = arith.constant 0 : index
    %c0_19 = arith.constant 0 : index
    %31 = vector.load %arg6[%c0_18, %c0_19] : memref<1x64xf32, #tpu.memory_space<vmem>>, vector<1x64xf32>
    %32 = vector.broadcast %31 : vector<1x64xf32> to vector<64x64xf32>
    %33 = arith.addf %30, %32 : vector<64x64xf32>
    %34 = vector.shape_cast %33 : vector<64x64xf32> to vector<8x8x64xf32>
    %c0_20 = arith.constant 0 : index
    %c0_21 = arith.constant 0 : index
    %c0_22 = arith.constant 0 : index
    %35 = vector.load %arg7[%c0_20, %c0_21, %c0_22] : memref<8x8x64xf32, #tpu.memory_space<vmem>>, vector<8x8x64xf32>
    tpu.vector_store %arg7[%c0_20, %c0_21, %c0_22], %34 {strides = array<i32>} : memref<8x8x64xf32, #tpu.memory_space<vmem>>, vector<8x8x64xf32>,
    return
  }
  func.func @transform_0(%arg0: i32) -> (i32, i32, i32, i32) {
    %c0_i32 = arith.constant 0 : i32
    %c0_i32_0 = arith.constant 0 : i32
    %c0_i32_1 = arith.constant 0 : i32
    %c0_i32_2 = arith.constant 0 : i32
    return %arg0, %c0_i32, %c0_i32_0, %c0_i32_1 : i32, i32, i32, i32
  }
  func.func @transform_1(%arg0: i32) -> (i32, i32, i32, i32) {
    %c1_i32 = arith.constant 1 : i32
    %c0_i32 = arith.constant 0 : i32
    %c0_i32_0 = arith.constant 0 : i32
    %c0_i32_1 = arith.constant 0 : i32
    return %arg0, %c1_i32, %c0_i32, %c0_i32_0 : i32, i32, i32, i32
  }
  func.func @transform_2(%arg0: i32) -> (i32, i32) {
    %c0_i32 = arith.constant 0 : i32
    %c0_i32_0 = arith.constant 0 : i32
    %c0_i32_1 = arith.constant 0 : i32
    return %c0_i32, %c0_i32_0 : i32, i32
  }
  func.func @transform_3(%arg0: i32) -> (i32, i32) {
    %c0_i32 = arith.constant 0 : i32
    %c0_i32_0 = arith.constant 0 : i32
    %c0_i32_1 = arith.constant 0 : i32
    return %c0_i32, %c0_i32_0 : i32, i32
  }
  func.func @transform_4(%arg0: i32) -> (i32, i32) {
    %c0_i32 = arith.constant 0 : i32
    %c0_i32_0 = arith.constant 0 : i32
    %c0_i32_1 = arith.constant 0 : i32
    return %c0_i32, %c0_i32_0 : i32, i32
  }
  func.func @transform_5(%arg0: i32) -> (i32, i32) {
    %c0_i32 = arith.constant 0 : i32
    %c0_i32_0 = arith.constant 0 : i32
    %c0_i32_1 = arith.constant 0 : i32
    return %c0_i32, %c0_i32_0 : i32, i32
  }
  func.func @transform_6(%arg0: i32) -> (i32, i32, i32) {
    %c0_i32 = arith.constant 0 : i32
    %c0_i32_0 = arith.constant 0 : i32
    %c0_i32_1 = arith.constant 0 : i32
    return %arg0, %c0_i32, %c0_i32_0 : i32, i32, i32
  }
}

</mosaic_0001>

<bundles_post_ra>
// kernel: tpu_custom_call.1
= control target key start
LH: loop header
LB: loop body
LE: loop exit
PB: predicated region body
PF: predicated region fallthrough
CT: control target
= control target key end

     0   :  { %s1425_s0 = inlined_call_operand.hbm [shape: f32[16,2,8,64], index: 0, kind: input, shape index: {}]   ;;  %s1426_s1 = inlined_call_operand.hbm [shape: f32[16,2,8,64], index: 1, kind: input, shape index: {}]   ;;  %s1427_s2 = inlined_call_operand.vmem [shape: f32[1,128], index: 2, kind: input, shape index: {}]   ;;  %s1428_s3 = inlined_call_operand.vmem [shape: f32[1,128], index: 3, kind: input, shape index: {}]   ;;  %s1429_s4 = inlined_call_operand.vmem [shape: bf16[128,64], index: 4, kind: input, shape index: {}]   ;;  %s1430_s5 = inlined_call_operand.vmem [shape: f32[1,64], index: 5, kind: input, shape index: {}]   ;;  %s1431_s6 = inlined_call_operand.hbm [shape: f32[16,8,64], index: 6, kind: output, shape index: {}]  }
   0x1   :  { %1437 = sst [smem:[#allocation13_spill]] %s1425_s0 }
   0x2   :  { %11 = vsyncpa [#allocation3], 0 }
   0x3   :  { %13 = vsyncpa [#allocation3 + $0x1], 0 }
   0x4   :  { %14 = vsyncpa [#allocation6], 0 }
   0x5   :  { %16 = vsyncpa [#allocation6 + $0x1], 0 }
   0x6   :  { %17 = vsyncpa [#allocation4], 0 }
   0x7   :  { %19 = vsyncpa [#allocation4 + $0x1], 0  ;;  %s1097_s21 = smov 0   ;;  %s1099_s22 = smov 0  }
   0x8   :  { %s1101_s23 = smov 0   ;;  %s1103_s24 = smov 0  }
   0x9 LB: > { %1438 = sst [smem:[#allocation11_spill]] %s1047_s23  ;;  %s1118_s25 = sadd.s32 4294967295, %s1051_s24   ;;  %s1051_s24 = sphi %s1103_s24, %s1458_s24   ;;  %s1047_s23 = sphi %s1101_s23, %s1455_s23   ;;  %s1043_s22 = sphi %s1099_s22, %s1457_s22   ;;  %s1039_s21 = sphi %s1097_s21, %s1456_s21  }
   0xa   : > { %s753_s26 = sadd.s32 4294967294, %s1051_s24   ;;  %s1122_s27 = sadd.s32 1, %s1051_s24  }
   0xb   : > { %s32_s28 = sadd.s32 1, %s1047_s23  ;;  %s29_s29 = ssub.s32 %s1051_s24, %s1122_s27 }
   0xc   : > { %p39_p0 = scmp.ne.s32.totalorder %s1047_s23, %s1043_s22  ;;  %p30_p1 = scmp.eq.s32.totalorder %s29_s29, 0 }
   0xd   : > { %p40_p2 = scmp.eq.s32.totalorder %s1051_s24, 0  ;;  %p45_p3 = scmp.ne.s32.totalorder %s1043_s22, %s1039_s21 }
   0xe   : > { %p46_p4 = scmp.eq.s32.totalorder %s1118_s25, 0  ;;  %p179_p7 = scmp.eq.s32.totalorder %s1118_s25, 1 }
   0xf   : > { %s1134_s30 = scalar_select %p30_p1, %s1047_s23, %s32_s28  }
  0x10   : > { %p1136_p5 = por %p40_p2, %p39_p0  ;;  %p1140_p6 = por %p46_p4, %p45_p3 }
  0x11   : > { %1439 = sst [smem:[#allocation12_spill]] %s1134_s30  ;;  %p185_p8 = scmp.eq.s32.totalorder %s753_s26, 1 }
  0x12   : > { %s1441_s8 = scalar_select %p1140_p6, 1, 0 }
  0x13   : > { %p856_p10 = scmp.lt.s32.totalorder %s1051_s24, 2  ;;  %p1147_p11 = por %p179_p7, %p39_p0 }
  0x14   : > { %p1151_p12 = por %p185_p8, %p45_p3  ;;  %s1156_s11 = sand.u32 1, %s1047_s23  }
  0x15   : > { %s1442_s9 = scalar_select %p1147_p11, 1, 0 }
  0x16   : > { %s1443_s10 = scalar_select %p1151_p12, 1, 0 }
  0x17   : > { %s784_s12 = sshll.u32 %s1051_s24, 11  ;;  %s1433_s13 = sshll.u32 %s1156_s11, 6 }
  0x18   : > { %s1444_s0 = sld [smem:[#allocation13_spill]]  ;;  %s221_s17 = scalar_lea.vmem [#allocation2], %s1433_s13 }
  0x19   : > { %s229_s18 = sshll.u32 %s221_s17, 4  ;;  %p1171_p13 = pnand %p856_p10, %p1136_p5  ;;  %s1175_s18 = int_to_ptr.vmem [resolvable:$true] %s229_s18 }
  0x1a   : > { %s218_s20 = scalar_lea.sflag [#allocation3], %s1156_s11 }
  0x1b   : > { %p922_p2 = pneg %p1171_p13 }
  0x1e   : > { %s1165_s16 = scalar_lea.hbm %s1444_s0, %s784_s12  ;;  %s925_s7 = scalar_lea.hbm %s1444_s0, 4096 }
  0x1f   : > { %s920_s26 = scalar_lea.hbm %s1165_s16, 1024  ;;  %p926_p5 = scmp.lt.u32.totalorder %s1165_s16, %s1444_s0 }
  0x20   : > { %p921_p1 = scmp.ne.s32.totalorder %s1165_s16, %s920_s26  ;;  %p927_p7 = scmp.lt.u32.totalorder %s925_s7, %s920_s26 }
  0x21   : > { %p929_p10 = scmp.lt.u32.totalorder %s920_s26, %s1165_s16 }
  0x22   : > { %p923_p3 = pnand %p922_p2, %p921_p1  ;;  %p928_p8 = por %p927_p7, %p926_p5 }
  0x24   : > { %p924_p4 = pneg %p923_p3  ;;  %p930_p9 = por %p929_p10, %p928_p8 }
  0x26   : > { %p931_p0 = pnand %p930_p9, %p924_p4 }
  0x28   : > { %934 = shalt.err (!%p931_p0)
}
  0x29   : > { %s935_s17 = scalar_lea.vmem %s1175_s18, 1024  ;;  %s1053_s28 = smov [#allocation2]  }
  0x2a   : > { %p936_p1 = scmp.ne.s32.totalorder %s1175_s18, %s935_s17  ;;  %s940_s29 = sshll.u32 %s1053_s28, 4  ;;  %s941_s29 = int_to_ptr.vmem [resolvable:$false] %s940_s29 }
  0x2b   : > { %s942_s14 = scalar_lea.vmem %s941_s29, 2048  ;;  %p943_p11 = scmp.lt.s32.totalorder %s1175_s18, %s941_s29 }
  0x2c   : > { %p938_p3 = pnand %p936_p1, %p922_p2  ;;  %p944_p5 = scmp.lt.s32.totalorder %s942_s14, %s935_s17 }
  0x2e   : > { %p939_p12 = pneg %p938_p3  ;;  %p945_p7 = por %p944_p5, %p943_p11 }
  0x30   : > { %p946_p8 = pnand %p945_p7, %p939_p12 }
  0x32   : > { %949 = shalt.err (!%p946_p8)
}
  0x33   : > { %s1435_s26 = smov 256   ;;  %s1055_s7 = smov 128  }
  0x34   : > { %s1056_s15 = smov 8   ;;  %p260_p9 = scmp.lt.s32.totalorder %s1051_s24, 3 }
  0x35   : > { %848 = dma.hbm_to_vmem [thread:$0]  (!%p1171_p13), %s1165_s16, 1024, %s1175_s18, %s218_s20, %s1435_s26, %s1055_s7, %s1056_s15  }
  0x36   : > { %s695_s29 = scalar_lea.hbm %s1426_s1, %s784_s12  ;;  %p1446_p11 = scmp.ge.s32.totalorder %s1051_s24, 1 }
  0x37   : > { %s1221_s13 = scalar_lea.hbm %s695_s29, 128  ;;  %s1448_s0 = sshll.u32 %s1156_s11, 6 }
  0x38   : > { %p1217_p12 = pnand %p1446_p11, %p260_p9  ;;  %s243_s30 = scalar_lea.vmem [#allocation5], %s1448_s0 }
  0x39   : > { %s252_s23 = sshll.u32 %s243_s30, 4  ;;  %s240_s16 = scalar_lea.sflag [#allocation6], %s1156_s11  ;;  %s1225_s23 = int_to_ptr.vmem [resolvable:$true] %s252_s23 }
  0x3a   : > { %s980_s18 = scalar_lea.hbm %s695_s29, 1152  ;;  %s955_s17 = scalar_lea.hbm %s1426_s1, 4096 }
  0x3b   : > { %p951_p0 = scmp.ne.s32.totalorder %s1221_s13, %s980_s18  ;;  %p956_p1 = scmp.lt.u32.totalorder %s1221_s13, %s1426_s1 }
  0x3c   : > { %p957_p3 = scmp.lt.u32.totalorder %s955_s17, %s980_s18  ;;  %p959_p7 = scmp.lt.u32.totalorder %s980_s18, %s1221_s13 }
  0x3d   : > { %p953_p4 = pnand %p951_p0, %p922_p2 }
  0x3e   : > { %p958_p5 = por %p957_p3, %p956_p1 }
  0x3f   : > { %p954_p10 = pneg %p953_p4 }
  0x40   : > { %p960_p8 = por %p959_p7, %p958_p5 }
  0x42   : > { %p961_p9 = pnand %p960_p8, %p954_p10 }
  0x44   : > { %964 = shalt.err (!%p961_p9)
}
  0x45   : > { %s965_s0 = scalar_lea.vmem %s1225_s23, 1024  ;;  %s1057_s30 = smov [#allocation5]  }
  0x46   : > { %p966_p11 = scmp.ne.s32.totalorder %s1225_s23, %s965_s0  ;;  %s970_s29 = sshll.u32 %s1057_s30, 4  ;;  %s971_s29 = int_to_ptr.vmem [resolvable:$false] %s970_s29 }
  0x47   : > { %s972_s26 = scalar_lea.vmem %s971_s29, 2048  ;;  %p973_p6 = scmp.lt.s32.totalorder %s1225_s23, %s971_s29 }
  0x48   : > { %p968_p0 = pnand %p966_p11, %p922_p2  ;;  %p974_p1 = scmp.lt.s32.totalorder %s972_s26, %s965_s0 }
  0x4a   : > { %p969_p4 = pneg %p968_p0  ;;  %p975_p3 = por %p974_p1, %p973_p6 }
  0x4c   : > { %p976_p5 = pnand %p975_p3, %p969_p4 }
  0x4e   : > { %979 = shalt.err (!%p976_p5)
}
  0x4f   : > { %s1449_s18 = smov 256   ;;  %264 = sbr.rel (%p1217_p12) target bundleno = 767 (0x2ff), region = 44 }
  0x50   : > { %851 = dma.hbm_to_vmem [thread:$0]  (!%p1171_p13), %s1221_s13, 1024, %s1225_s23, %s240_s16, %s1449_s18, %s1055_s7, %s1056_s15  }
  0x51   : > { %s1258_s12 = sand.u32 (!%p1217_p12), 1, %s1043_s22   ;;  %p1450_p6 = scmp.ne.s32.totalorder (!%p1217_p12), %s1441_s8, 0 }
  0x52   : > { %s1261_s20 = sshll.u32 (!%p1217_p12), %s1258_s12, 6  ;;  %s267_s19 = scalar_lea.sflag (!%p1217_p12), [#allocation3], %s1258_s12 }
  0x53   : > { %s1265_s17 = scalar_lea.vmem (!%p1217_p12), [#allocation2], %s1261_s20 }
  0x56   : > { %1026 = dma.done.wait (%p1450_p6), %s267_s19, 1024  }
  0x57   : > { %1028 = vsyncadd (%p1450_p6), %s267_s19, 4294966272  ;;  %s276_s23 = scalar_lea.sflag [#allocation6], %s1258_s12  ;;  %s279_s11 = scalar_lea.vmem [#allocation5], %s1261_s20 }
  0x58   : > { %1030 = dma.done.wait (%p1450_p6), %s276_s23, 1024  }
  0x59   : > { %1032 = vsyncadd (%p1450_p6), %s276_s23, 4294966272  ;;  %v325_v0 = vld [vmem:[%s279_s11] sm:$0xff]  ;;  %s1058_s13 = smov 64   ;;  %v326_v2 = vld [vmem:[%s279_s11 + $0x8] sm:$0xff]  ;;  %vm365_vm0 = vcmask 523264   ;;  %s312_s0 = scalar_lea.vmem [#allocation7], %s1261_s20 }
  0x5a   : > { %v329_v1 = vld [vmem:[%s279_s11 + $0x20] sm:$0xff]  ;;  %341 = vrot.lane.b32.xlu0 %v325_v0, %s1058_s13  ;;  %v330_v3 = vld [vmem:[%s279_s11 + $0x28] sm:$0xff]  ;;  %v327_v4 = vld [vmem:[%s279_s11 + $0x10] sm:$0xff]  ;;  %s786_s30 = sshll.u32 %s1118_s25, 10  ;;  %s655_s29 = sshll.u32 %s312_s0, 4  ;;  %s1378_s29 = int_to_ptr.vmem [resolvable:$true] %s655_s29 }
  0x5b   : > { %349 = vrot.lane.b32.xlu1 %v329_v1, %s1058_s13  ;;  %v328_v5 = vld [vmem:[%s279_s11 + $0x18] sm:$0xff]  ;;  %v331_v6 = vld [vmem:[%s279_s11 + $0x30] sm:$0xff]  ;;  %v317_v8 = vld [vmem:[%s1265_s17] sm:$0xff]  ;;  %s1376_s26 = scalar_lea.hbm %s1431_s6, %s786_s30  ;;  %s642_s18 = scalar_lea.sflag [#allocation4], %s1258_s12 }
  0x5c   : > { %v332_v7 = vld [vmem:[%s279_s11 + $0x38] sm:$0xff]  ;;  %v321_v11 = vld [vmem:[%s1265_s17 + $0x20] sm:$0xff]  ;;  %v318_v13 = vld [vmem:[%s1265_s17 + $0x8] sm:$0xff]  ;;  %s981_s19 = scalar_lea.vmem %s1378_s29, 1024  ;;  %p1451_p2 = scmp.ne.s32.totalorder %s1442_s9, 0 }
  0x5d   : > { %v322_v17 = vld [vmem:[%s1265_s17 + $0x28] sm:$0xff]  ;;  %v319_v19 = vld [vmem:[%s1265_s17 + $0x10] sm:$0xff]  ;;  %v320_v23 = vld [vmem:[%s1265_s17 + $0x18] sm:$0xff]  ;;  %p982_p13 = scmp.ne.s32.totalorder %s1378_s29, %s981_s19 }
  0x5e   : > { %343 = vrot.lane.b32.xlu0 %v326_v2, %s1058_s13  ;;  %v323_v25 = vld [vmem:[%s1265_s17 + $0x30] sm:$0xff]  ;;  %v324_v29 = vld [vmem:[%s1265_s17 + $0x38] sm:$0xff]  ;;  %v896_v0 = vld [vmem:[%s1429_s4] sm:$0xff]   ;;  %s1059_s17 = smov [#allocation7]  }
  0x5f   : > { %351 = vrot.lane.b32.xlu1 %v330_v3, %s1058_s13  ;;  %799 = vmatprep.subr.bf16.mxu0 %v896_v0  ;;  %v897_v1 = vld [vmem:[%s1429_s4 + $0x8] sm:$0xff]   ;;  %v898_v2 = vld [vmem:[%s1429_s4 + $0x10] sm:$0xff]   ;;  %v899_v3 = vld [vmem:[%s1429_s4 + $0x18] sm:$0xff]   ;;  %p983_p12 = pnand %p982_p13, %p1451_p2  ;;  %s985_s23 = sshll.u32 %s1059_s17, 4  ;;  %s986_s23 = int_to_ptr.vmem [resolvable:$false] %s985_s23 }
  0x60   : > { %823 = vmatprep.subr.bf16.mxu1 %v896_v0  ;;  %800 = vmatpush3.bf16.msra.mxu0 %v896_v0  ;;  %s987_s11 = scalar_lea.vmem %s986_s23, 2048  ;;  %p988_p7 = scmp.lt.s32.totalorder %s1378_s29, %s986_s23 }
  0x61   : > { %831 = vmatpush3.bf16.msra.mxu1 %v896_v0  ;;  %801 = vmatprep.subr.bf16.mxu0 %v897_v1  ;;  %p984_p10 = pneg %p983_p12  ;;  %p989_p8 = scmp.lt.s32.totalorder %s987_s11, %s981_s19 }
  0x62   : > { %345 = vrot.lane.b32.xlu0 %v327_v4, %s1058_s13  ;;  %824 = vmatprep.subr.bf16.mxu1 %v897_v1  ;;  %v900_v4 = vld [vmem:[%s1429_s4 + $0x20] sm:$0xff]  }
  0x63   : > { %347 = vrot.lane.b32.xlu1 %v328_v5, %s1058_s13  ;;  %v901_v5 = vld [vmem:[%s1429_s4 + $0x28] sm:$0xff]   ;;  %p990_p9 = por %p989_p8, %p988_p7 }
  0x64   : > { %802 = vmatpush3.bf16.msra.mxu0 %v897_v1 }
  0x65   : > { %832 = vmatpush3.bf16.msra.mxu1 %v897_v1  ;;  %803 = vmatprep.subr.bf16.mxu0 %v898_v2  ;;  %p991_p11 = pnand %p990_p9, %p984_p10 }
  0x66   : > { %353 = vrot.lane.b32.xlu0 %v331_v6, %s1058_s13  ;;  %825 = vmatprep.subr.bf16.mxu1 %v898_v2  ;;  %v902_v6 = vld [vmem:[%s1429_s4 + $0x30] sm:$0xff]  }
  0x67   : > { %355 = vrot.lane.b32.xlu1 %v332_v7, %s1058_s13  ;;  %v903_v7 = vld [vmem:[%s1429_s4 + $0x38] sm:$0xff]  }
  0x68   : > { %804 = vmatpush3.bf16.msra.mxu0 %v898_v2 }
  0x69   : > { %833 = vmatpush3.bf16.msra.mxu1 %v898_v2  ;;  %805 = vmatprep.subr.bf16.mxu0 %v899_v3 }
  0x6a   : > { %826 = vmatprep.subr.bf16.mxu1 %v899_v3 }
  0x6c   : > { %806 = vmatpush3.bf16.msra.mxu0 %v899_v3 }
  0x6d   : > { %834 = vmatpush3.bf16.msra.mxu1 %v899_v3  ;;  %807 = vmatprep.subr.bf16.mxu0 %v900_v4 }
  0x6e   : > { %827 = vmatprep.subr.bf16.mxu1 %v900_v4 }
  0x70   : > { %808 = vmatpush3.bf16.msra.mxu0 %v900_v4 }
  0x71   : > { %835 = vmatpush3.bf16.msra.mxu1 %v900_v4  ;;  %809 = vmatprep.subr.bf16.mxu0 %v901_v5 }
  0x72   : > { %828 = vmatprep.subr.bf16.mxu1 %v901_v5 }
  0x74   : > { %810 = vmatpush3.bf16.msra.mxu0 %v901_v5 }
  0x75   : > { %836 = vmatpush3.bf16.msra.mxu1 %v901_v5  ;;  %811 = vmatprep.subr.bf16.mxu0 %v902_v6 }
  0x76   : > { %829 = vmatprep.subr.bf16.mxu1 %v902_v6 }
  0x78   : > { %812 = vmatpush3.bf16.msra.mxu0 %v902_v6 }
  0x79   : > { %837 = vmatpush3.bf16.msra.mxu1 %v902_v6  ;;  %813 = vmatprep.subr.bf16.mxu0 %v903_v7 }
  0x7a   : > { %830 = vmatprep.subr.bf16.mxu1 %v903_v7 }
  0x7c   : > { %814 = vmatpush3.bf16.msra.mxu0 %v903_v7 }
  0x7d   : > { %838 = vmatpush3.bf16.msra.mxu1 %v903_v7 }
  0xcc   : > { %v342_v9 = vpop.permute.xlu0 %341 }
  0xcd   : > { %v350_v10 = vpop.permute.xlu1 %349  ;;  %v366_v12 = vsel %vm365_vm0, %v317_v8, %v342_v9 }
  0xce   : > { %374 = vadd.xlane.f32.xlu0 %v366_v12  ;;  %v370_v14 = vsel %vm365_vm0, %v321_v11, %v350_v10 }
  0xd0   : > { %v344_v15 = vpop.permute.xlu0 %343 }
  0xd1   : > { %v352_v16 = vpop.permute.xlu1 %351  ;;  %v367_v18 = vsel %vm365_vm0, %v318_v13, %v344_v15 }
  0xd2   : > { %376 = vadd.xlane.f32.xlu1 %v367_v18  ;;  %382 = vadd.xlane.f32.xlu0 %v370_v14  ;;  %v371_v20 = vsel %vm365_vm0, %v322_v17, %v352_v16 }
  0xd4   : > { %v346_v21 = vpop.permute.xlu0 %345 }
  0xd5   : > { %v348_v22 = vpop.permute.xlu1 %347  ;;  %v368_v24 = vsel %vm365_vm0, %v319_v19, %v346_v21 }
  0xd6   : > { %378 = vadd.xlane.f32.xlu1 %v368_v24  ;;  %384 = vadd.xlane.f32.xlu0 %v371_v20  ;;  %v369_v26 = vsel %vm365_vm0, %v320_v23, %v348_v22 }
  0xd8   : > { %v354_v27 = vpop.permute.xlu0 %353 }
  0xd9   : > { %v356_v28 = vpop.permute.xlu1 %355  ;;  %v372_v30 = vsel %vm365_vm0, %v323_v25, %v354_v27 }
  0xda   : > { %386 = vadd.xlane.f32.xlu1 %v372_v30  ;;  %380 = vadd.xlane.f32.xlu0 %v369_v26  ;;  %v373_v31 = vsel %vm365_vm0, %v324_v29, %v356_v28 }
  0xde   : > { %388 = vadd.xlane.f32.xlu0 %v373_v31 }
 0x15b   : > { %v375_v32 = vpop.xlane.xlu0 %374 }
 0x15c   : > { %v391_v33 = vmul.f32 0.0078125, %v375_v32 }
 0x15e   : > { %v1293_v34 = vsub.f32 %v366_v12, %v391_v33  ;;  %v767_v33 = vld [vmem:[%s1427_s2] ss:$0 sm:$0xff] }
 0x15f   : > { %v377_v35 = vpop.xlane.xlu1 %376  ;;  %v383_v36 = vpop.xlane.xlu0 %382 }
 0x160   : > { %v392_v37 = vmul.f32 0.0078125, %v377_v35  ;;  %v395_v38 = vmul.f32 0.0078125, %v383_v36  ;;  %v407_v39 = vmul.f32 %v1293_v34, %v1293_v34 }
 0x162   : > { %v1297_v40 = vsub.f32 %v367_v18, %v392_v37  ;;  %v1299_v41 = vsub.f32 %v370_v14, %v395_v38  ;;  %415 = vadd.xlane.f32.xlu1 %v407_v39 }
 0x163   : > { %v379_v42 = vpop.xlane.xlu1 %378  ;;  %v385_v43 = vpop.xlane.xlu0 %384 }
 0x164   : > { %v393_v44 = vmul.f32 0.0078125, %v379_v42  ;;  %v396_v45 = vmul.f32 0.0078125, %v385_v43  ;;  %v408_v46 = vmul.f32 %v1297_v40, %v1297_v40  ;;  %v411_v47 = vmul.f32 %v1299_v41, %v1299_v41  ;;  %v768_v42 = vld [vmem:[%s1428_s3] ss:$0 sm:$0xff] }
 0x166   : > { %v1305_v48 = vsub.f32 %v368_v24, %v393_v44  ;;  %v1307_v49 = vsub.f32 %v371_v20, %v396_v45  ;;  %417 = vadd.xlane.f32.xlu0 %v408_v46  ;;  %423 = vadd.xlane.f32.xlu1 %v411_v47 }
 0x167   : > { %v387_v50 = vpop.xlane.xlu1 %386  ;;  %v381_v51 = vpop.xlane.xlu0 %380 }
 0x168   : > { %v397_v52 = vmul.f32 0.0078125, %v387_v50  ;;  %v394_v53 = vmul.f32 0.0078125, %v381_v51  ;;  %v409_v54 = vmul.f32 %v1305_v48, %v1305_v48  ;;  %v412_v55 = vmul.f32 %v1307_v49, %v1307_v49 }
 0x16a   : > { %v1313_v56 = vsub.f32 %v372_v30, %v397_v52  ;;  %v1315_v57 = vsub.f32 %v369_v26, %v394_v53  ;;  %419 = vadd.xlane.f32.xlu1 %v409_v54  ;;  %425 = vadd.xlane.f32.xlu0 %v412_v55 }
 0x16b   : > { %v389_v58 = vpop.xlane.xlu0 %388 }
 0x16c   : > { %v398_v59 = vmul.f32 0.0078125, %v389_v58  ;;  %v413_v60 = vmul.f32 %v1313_v56, %v1313_v56  ;;  %v410_v61 = vmul.f32 %v1315_v57, %v1315_v57 }
 0x16e   : > { %v1321_v62 = vsub.f32 %v373_v31, %v398_v59  ;;  %427 = vadd.xlane.f32.xlu1 %v413_v60  ;;  %421 = vadd.xlane.f32.xlu0 %v410_v61 }
 0x170   : > { %v414_v63 = vmul.f32 %v1321_v62, %v1321_v62 }
 0x172   : > { %429 = vadd.xlane.f32.xlu0 %v414_v63 }
 0x1ef   : > { %v416_v8 = vpop.xlane.xlu1 %415 }
 0x1f0   : > { %v431_v9 = vmul.f32 0.0078125, %v416_v8 }
 0x1f2   : > { %v439_v10 = vadd.f32 1e-05, %v431_v9 }
 0x1f3   : > { %v424_v11 = vpop.xlane.xlu1 %423  ;;  %v418_v12 = vpop.xlane.xlu0 %417 }
 0x1f4   : > { %904 = vrsqrt.f32 %v439_v10  ;;  %v435_v13 = vmul.f32 0.0078125, %v424_v11  ;;  %v432_v14 = vmul.f32 0.0078125, %v418_v12 }
 0x1f6   : > { %v443_v15 = vadd.f32 1e-05, %v435_v13  ;;  %v440_v16 = vadd.f32 1e-05, %v432_v14 }
 0x1f7   : > { %v420_v17 = vpop.xlane.xlu1 %419  ;;  %v426_v18 = vpop.xlane.xlu0 %425 }
 0x1f8   : > { %906 = vrsqrt.f32 %v443_v15  ;;  %v433_v19 = vmul.f32 0.0078125, %v420_v17  ;;  %v436_v20 = vmul.f32 0.0078125, %v426_v18 }
 0x1f9   : > { %908 = vrsqrt.f32 %v440_v16 }
 0x1fa   : > { %v441_v21 = vadd.f32 1e-05, %v433_v19  ;;  %v444_v22 = vadd.f32 1e-05, %v436_v20 }
 0x1fb   : > { %v428_v23 = vpop.xlane.xlu1 %427  ;;  %v422_v24 = vpop.xlane.xlu0 %421 }
 0x1fc   : > { %910 = vrsqrt.f32 %v441_v21  ;;  %v437_v25 = vmul.f32 0.0078125, %v428_v23  ;;  %v434_v26 = vmul.f32 0.0078125, %v422_v24 }
 0x1fd   : > { %912 = vrsqrt.f32 %v444_v22 }
 0x1fe   : > { %v905_v27 = vpop.eup %904  ;;  %v445_v28 = vadd.f32 1e-05, %v437_v25  ;;  %v442_v29 = vadd.f32 1e-05, %v434_v26 }
 0x1ff   : > { %v430_v30 = vpop.xlane.xlu0 %429  ;;  %v455_v31 = vmul.f32 %v905_v27, %v1293_v34 }
 0x200   : > { %914 = vrsqrt.f32 %v445_v28  ;;  %v438_v32 = vmul.f32 0.0078125, %v430_v30 }
 0x201   : > { %916 = vrsqrt.f32 %v442_v29  ;;  %v470_v38 = vmul.f32 %v767_v33, %v455_v31 }
 0x202   : > { %v907_v35 = vpop.eup %906  ;;  %v446_v36 = vadd.f32 1e-05, %v438_v32 }
 0x203   : > { %v909_v37 = vpop.eup %908  ;;  %v459_v34 = vmul.f32 %v907_v35, %v1299_v41  ;;  %v485_v46 = vadd.f32 %v768_v42, %v470_v38 }
 0x204   : > { %918 = vrsqrt.f32 %v446_v36  ;;  %v456_v39 = vmul.f32 %v909_v37, %v1297_v40 }
 0x205   : > { %v474_v51 = vmul.f32 %v767_v33, %v459_v34 }
 0x206   : > { %v911_v43 = vpop.eup %910  ;;  %v471_v44 = vmul.f32 %v767_v33, %v456_v39 }
 0x207   : > { %v913_v45 = vpop.eup %912  ;;  %v457_v52 = vmul.f32 %v911_v43, %v1305_v48  ;;  %v489_v59 = vadd.f32 %v768_v42, %v474_v51 }
 0x208   : > { %v486_v47 = vadd.f32 %v768_v42, %v471_v44  ;;  %v460_v50 = vmul.f32 %v913_v45, %v1307_v49 }
 0x209   : > { %v472_v61 = vmul.f32 %v767_v33, %v457_v52 }
 0x20a   : > { %v915_v53 = vpop.eup %914  ;;  %v493_v54 = vpack.c.bf16 %v486_v47, %v485_v46  ;;  %v475_v55 = vmul.f32 %v767_v33, %v460_v50 }
 0x20b   : > { %v917_v40 = vpop.eup %916  ;;  %v461_v58 = vmul.f32 %v915_v53, %v1313_v56  ;;  %v487_v48 = vadd.f32 %v768_v42, %v472_v61 }
 0x20c   : > { %815 = vmatprep.mubr.bf16.mxu0 %v493_v54  ;;  %v490_v60 = vadd.f32 %v768_v42, %v475_v55  ;;  %v458_v41 = vmul.f32 %v917_v40, %v1315_v57  ;;  %v769_v57 = vld [vmem:[%s1430_s5] ss:$0 sm:$0xff] }
 0x20d   : > { %v476_v2 = vmul.f32 %v767_v33, %v461_v58 }
 0x20e   : > { %v919_v63 = vpop.eup %918  ;;  %v495_v0 = vpack.c.bf16 %v490_v60, %v489_v59  ;;  %v473_v1 = vmul.f32 %v767_v33, %v458_v41 }
 0x20f   : > { %v462_v49 = vmul.f32 %v919_v63, %v1321_v62  ;;  %v491_v6 = vadd.f32 %v768_v42, %v476_v2 }
 0x210   : > { %819 = vmatprep.mubr.bf16.mxu1 %v495_v0  ;;  %v488_v3 = vadd.f32 %v768_v42, %v473_v1 }
 0x211   : > { %v477_v4 = vmul.f32 %v767_v33, %v462_v49 }
 0x212   : > { %v494_v5 = vpack.c.bf16 %v488_v3, %v487_v48 }
 0x213   : > { %v492_v56 = vadd.f32 %v768_v42, %v477_v4 }
 0x214   : > { %816 = vmatmul.mubr.bf16.vlgmr.msra.gmra.mrb[0].mxu0 %v494_v5 }
 0x215   : > { %v496_v7 = vpack.c.bf16 %v492_v56, %v491_v6 }
 0x217   : > { %820 = vmatmul.mubr.bf16.vlgmr.msra.gmra.mrb[0].mxu1 %v496_v7 }
 0x2e7   : > { %v817_v8 = vpop.f32.mrb[0].mxu0 }
 0x2e8   : > { %v611_v9 = vadd.f32 %v817_v8, %v769_v57  ;;  %v602_v62 = vpop.f32.mrb[1].mxu0 }
 0x2e9   : > { %v603_v10 = vadd.f32 %v769_v57, %v602_v62  ;;  %v818_v11 = vpop.f32.mrb[2].mxu0 }
 0x2ea   : > { %635 = vst.msk [vmem:[%s312_s0 + $0x10] sm:$0xff] %vm365_vm0, %v611_v9  ;;  %v614_v12 = vadd.f32 %v818_v11, %v769_v57  ;;  %v605_v13 = vpop.f32.mrb[3].mxu0  ;;  %v821_v14 = vpop.f32.mrb[0].mxu1 }
 0x2eb   : > { %633 = vst.msk [vmem:[%s312_s0] sm:$0xff] %vm365_vm0, %v603_v10  ;;  %v606_v15 = vadd.f32 %v769_v57, %v605_v13  ;;  %v627_v16 = vadd.f32 %v821_v14, %v769_v57  ;;  %v618_v17 = vpop.f32.mrb[1].mxu1 }
 0x2ec   : > { %636 = vst.msk [vmem:[%s312_s0 + $0x18] sm:$0xff] %vm365_vm0, %v614_v12  ;;  %v619_v18 = vadd.f32 %v769_v57, %v618_v17  ;;  %v822_v19 = vpop.f32.mrb[2].mxu1 }
 0x2ed   : > { %634 = vst.msk [vmem:[%s312_s0 + $0x8] sm:$0xff] %vm365_vm0, %v606_v15  ;;  %639 = vst.msk [vmem:[%s312_s0 + $0x30] sm:$0xff] %vm365_vm0, %v627_v16  ;;  %v630_v20 = vadd.f32 %v822_v19, %v769_v57  ;;  %v621_v21 = vpop.f32.mrb[3].mxu1 }
 0x2ee   : > { %637 = vst.msk [vmem:[%s312_s0 + $0x20] sm:$0xff] %vm365_vm0, %v619_v18  ;;  %v622_v22 = vadd.f32 %v769_v57, %v621_v21 }
 0x2ef   : > { %640 = vst.msk [vmem:[%s312_s0 + $0x38] sm:$0xff] %vm365_vm0, %v630_v20 }
 0x2f0   : > { %638 = vst.msk [vmem:[%s312_s0 + $0x28] sm:$0xff] %vm365_vm0, %v622_v22 }
 0x2f1   : > { %994 = shalt.err (!%p991_p11)
}
 0x2f2   : > { %s995_s13 = scalar_lea.hbm %s1376_s26, 1024  ;;  %s999_s15 = scalar_lea.hbm %s1431_s6, 2048 }
 0x2f3   : > { %p996_p0 = scmp.ne.s32.totalorder %s1376_s26, %s995_s13  ;;  %p1000_p3 = scmp.lt.u32.totalorder %s1376_s26, %s1431_s6 }
 0x2f4   : > { %p1001_p5 = scmp.lt.u32.totalorder %s999_s15, %s995_s13  ;;  %p1003_p13 = scmp.lt.u32.totalorder %s995_s13, %s1376_s26 }
 0x2f5   : > { %p997_p4 = pnand %p996_p0, %p1451_p2 }
 0x2f6   : > { %p1002_p6 = por %p1001_p5, %p1000_p3 }
 0x2f7   : > { %p998_p1 = pneg %p997_p4 }
 0x2f8   : > { %p1004_p12 = por %p1003_p13, %p1002_p6 }
 0x2fa   : > { %p1005_p10 = pnand %p1004_p12, %p998_p1 }
 0x2fc   : > { %1008 = shalt.err (!%p1005_p10)
}
 0x2fd   : > { %s1060_s28 = smov 128   ;;  %s1061_s0 = smov 8  }
 0x2fe   : > { %843 = dma.vmem_to_hbm [thread:$0]  (%p1451_p2), %s1378_s29, 1024, %s1376_s26, %s642_s18, %s1060_s28, %s1060_s28, %s1061_s0  }
 0x2ff PF: > { %s670_s30 = sand.u32 1, %s1039_s21   ;;  %p1452_p7 = scmp.ne.s32.totalorder %s1443_s10, 0 }
 0x300   : > { %p1453_p8 = scmp.ge.s32.totalorder %s1051_s24, 2  ;;  %s671_s20 = scalar_lea.sflag [#allocation4], %s670_s30 }
 0x302   : > { %p853_p9 = pnand %p1453_p8, %p1452_p7 }
 0x304   : > { %1034 = dma.done.wait (!%p853_p9), %s671_s20, 1024  }
 0x305   : > { %1036 = vsyncadd (!%p853_p9), %s671_s20, 4294966272  ;;  %s1454_s25 = sld [smem:[#allocation11_spill]]  ;;  %s1455_s23 = sld [smem:[#allocation12_spill]] }
 0x306   : > { %p22_p11 = scmp.ge.s32.totalorder %s1122_s27, 4   ;;  %s1456_s21 = smov %s1043_s22 }
 0x307   : > { %s1458_s24 = smov %s1122_s27 }
 0x308   :  { %24 = sbr.rel (!%p22_p11) target bundleno = 9 (0x9), region = 102 }
 0x30b   : > { %s1457_s22 = smov %s1454_s25 }
 0x30f   :  { %676 = vsyncpa [#allocation3], 1 }
 0x310   :  { %678 = vsyncpa [#allocation3 + $0x1], 1 }
 0x311   :  { %679 = vsyncpa [#allocation6], 1 }
 0x312   :  { %681 = vsyncpa [#allocation6 + $0x1], 1 }
 0x313   :  { %682 = vsyncpa [#allocation4], 1 }
 0x314   :  { %684 = vsyncpa [#allocation4 + $0x1], 1 }

// kernel: tpu_custom_call.1
= control target key start
LH: loop header
LB: loop body
LE: loop exit
PB: predicated region body
PF: predicated region fallthrough
CT: control target
= control target key end

     0   :  { %s1425_s0 = inlined_call_operand.hbm [shape: f32[16,2,8,64], index: 0, kind: input, shape index: {}]   ;;  %s1426_s1 = inlined_call_operand.hbm [shape: f32[16,2,8,64], index: 1, kind: input, shape index: {}]   ;;  %s1427_s2 = inlined_call_operand.vmem [shape: f32[1,128], index: 2, kind: input, shape index: {}]   ;;  %s1428_s3 = inlined_call_operand.vmem [shape: f32[1,128], index: 3, kind: input, shape index: {}]   ;;  %s1429_s4 = inlined_call_operand.vmem [shape: bf16[128,64], index: 4, kind: input, shape index: {}]   ;;  %s1430_s5 = inlined_call_operand.vmem [shape: f32[1,64], index: 5, kind: input, shape index: {}]   ;;  %s1431_s6 = inlined_call_operand.hbm [shape: f32[16,8,64], index: 6, kind: output, shape index: {}]  }
   0x1   :  { %1437 = sst [smem:[#allocation13_spill]] %s1425_s0 }
   0x2   :  { %11 = vsyncpa [#allocation3], 0 }
   0x3   :  { %13 = vsyncpa [#allocation3 + $0x1], 0 }
   0x4   :  { %14 = vsyncpa [#allocation6], 0 }
   0x5   :  { %16 = vsyncpa [#allocation6 + $0x1], 0 }
   0x6   :  { %17 = vsyncpa [#allocation4], 0 }
   0x7   :  { %19 = vsyncpa [#allocation4 + $0x1], 0  ;;  %s1097_s21 = smov 0   ;;  %s1099_s22 = smov 0  }
   0x8   :  { %s1101_s23 = smov 0   ;;  %s1103_s24 = smov 0  }
   0x9 LB: > { %1438 = sst [smem:[#allocation11_spill]] %s1047_s23  ;;  %s1118_s25 = sadd.s32 4294967295, %s1051_s24   ;;  %s1051_s24 = sphi %s1103_s24, %s1458_s24   ;;  %s1047_s23 = sphi %s1101_s23, %s1455_s23   ;;  %s1043_s22 = sphi %s1099_s22, %s1457_s22   ;;  %s1039_s21 = sphi %s1097_s21, %s1456_s21  }
   0xa   : > { %s753_s26 = sadd.s32 4294967294, %s1051_s24   ;;  %s1122_s27 = sadd.s32 1, %s1051_s24  }
   0xb   : > { %s32_s28 = sadd.s32 1, %s1047_s23  ;;  %s29_s29 = ssub.s32 %s1051_s24, %s1122_s27 }
   0xc   : > { %p39_p0 = scmp.ne.s32.totalorder %s1047_s23, %s1043_s22  ;;  %p30_p1 = scmp.eq.s32.totalorder %s29_s29, 0 }
   0xd   : > { %p40_p2 = scmp.eq.s32.totalorder %s1051_s24, 0  ;;  %p45_p3 = scmp.ne.s32.totalorder %s1043_s22, %s1039_s21 }
   0xe   : > { %p46_p4 = scmp.eq.s32.totalorder %s1118_s25, 0  ;;  %p179_p7 = scmp.eq.s32.totalorder %s1118_s25, 1 }
   0xf   : > { %s1134_s30 = scalar_select %p30_p1, %s1047_s23, %s32_s28  }
  0x10   : > { %p1136_p5 = por %p40_p2, %p39_p0  ;;  %p1140_p6 = por %p46_p4, %p45_p3 }
  0x11   : > { %1439 = sst [smem:[#allocation12_spill]] %s1134_s30  ;;  %p185_p8 = scmp.eq.s32.totalorder %s753_s26, 1 }
  0x12   : > { %s1441_s8 = scalar_select %p1140_p6, 1, 0 }
  0x13   : > { %p856_p10 = scmp.lt.s32.totalorder %s1051_s24, 2  ;;  %p1147_p11 = por %p179_p7, %p39_p0 }
  0x14   : > { %p1151_p12 = por %p185_p8, %p45_p3  ;;  %s1156_s11 = sand.u32 1, %s1047_s23  }
  0x15   : > { %s1442_s9 = scalar_select %p1147_p11, 1, 0 }
  0x16   : > { %s1443_s10 = scalar_select %p1151_p12, 1, 0 }
  0x17   : > { %s784_s12 = sshll.u32 %s1051_s24, 11  ;;  %s1433_s13 = sshll.u32 %s1156_s11, 6 }
  0x18   : > { %s1444_s0 = sld [smem:[#allocation13_spill]]  ;;  %s221_s17 = scalar_lea.vmem [#allocation2], %s1433_s13 }
  0x19   : > { %s229_s18 = sshll.u32 %s221_s17, 4  ;;  %p1171_p13 = pnand %p856_p10, %p1136_p5  ;;  %s1175_s18 = int_to_ptr.vmem [resolvable:$true] %s229_s18 }
  0x1a   : > { %s218_s20 = scalar_lea.sflag [#allocation3], %s1156_s11 }
  0x1b   : > { %p922_p2 = pneg %p1171_p13 }
  0x1e   : > { %s1165_s16 = scalar_lea.hbm %s1444_s0, %s784_s12  ;;  %s925_s7 = scalar_lea.hbm %s1444_s0, 4096 }
  0x1f   : > { %s920_s26 = scalar_lea.hbm %s1165_s16, 1024  ;;  %p926_p5 = scmp.lt.u32.totalorder %s1165_s16, %s1444_s0 }
  0x20   : > { %p921_p1 = scmp.ne.s32.totalorder %s1165_s16, %s920_s26  ;;  %p927_p7 = scmp.lt.u32.totalorder %s925_s7, %s920_s26 }
  0x21   : > { %p929_p10 = scmp.lt.u32.totalorder %s920_s26, %s1165_s16 }
  0x22   : > { %p923_p3 = pnand %p922_p2, %p921_p1  ;;  %p928_p8 = por %p927_p7, %p926_p5 }
  0x24   : > { %p924_p4 = pneg %p923_p3  ;;  %p930_p9 = por %p929_p10, %p928_p8 }
  0x26   : > { %p931_p0 = pnand %p930_p9, %p924_p4 }
  0x28   : > { %934 = shalt.err (!%p931_p0)
}
  0x29   : > { %s935_s17 = scalar_lea.vmem %s1175_s18, 1024  ;;  %s1053_s28 = smov [#allocation2]  }
  0x2a   : > { %p936_p1 = scmp.ne.s32.totalorder %s1175_s18, %s935_s17  ;;  %s940_s29 = sshll.u32 %s1053_s28, 4  ;;  %s941_s29 = int_to_ptr.vmem [resolvable:$false] %s940_s29 }
  0x2b   : > { %s942_s14 = scalar_lea.vmem %s941_s29, 2048  ;;  %p943_p11 = scmp.lt.s32.totalorder %s1175_s18, %s941_s29 }
  0x2c   : > { %p938_p3 = pnand %p936_p1, %p922_p2  ;;  %p944_p5 = scmp.lt.s32.totalorder %s942_s14, %s935_s17 }
  0x2e   : > { %p939_p12 = pneg %p938_p3  ;;  %p945_p7 = por %p944_p5, %p943_p11 }
  0x30   : > { %p946_p8 = pnand %p945_p7, %p939_p12 }
  0x32   : > { %949 = shalt.err (!%p946_p8)
}
  0x33   : > { %s1435_s26 = smov 256   ;;  %s1055_s7 = smov 128  }
  0x34   : > { %s1056_s15 = smov 8   ;;  %p260_p9 = scmp.lt.s32.totalorder %s1051_s24, 3 }
  0x35   : > { %848 = dma.hbm_to_vmem [thread:$0]  (!%p1171_p13), %s1165_s16, 1024, %s1175_s18, %s218_s20, %s1435_s26, %s1055_s7, %s1056_s15  }
  0x36   : > { %s695_s29 = scalar_lea.hbm %s1426_s1, %s784_s12  ;;  %p1446_p11 = scmp.ge.s32.totalorder %s1051_s24, 1 }
  0x37   : > { %s1221_s13 = scalar_lea.hbm %s695_s29, 128  ;;  %s1448_s0 = sshll.u32 %s1156_s11, 6 }
  0x38   : > { %p1217_p12 = pnand %p1446_p11, %p260_p9  ;;  %s243_s30 = scalar_lea.vmem [#allocation5], %s1448_s0 }
  0x39   : > { %s252_s23 = sshll.u32 %s243_s30, 4  ;;  %s240_s16 = scalar_lea.sflag [#allocation6], %s1156_s11  ;;  %s1225_s23 = int_to_ptr.vmem [resolvable:$true] %s252_s23 }
  0x3a   : > { %s980_s18 = scalar_lea.hbm %s695_s29, 1152  ;;  %s955_s17 = scalar_lea.hbm %s1426_s1, 4096 }
  0x3b   : > { %p951_p0 = scmp.ne.s32.totalorder %s1221_s13, %s980_s18  ;;  %p956_p1 = scmp.lt.u32.totalorder %s1221_s13, %s1426_s1 }
  0x3c   : > { %p957_p3 = scmp.lt.u32.totalorder %s955_s17, %s980_s18  ;;  %p959_p7 = scmp.lt.u32.totalorder %s980_s18, %s1221_s13 }
  0x3d   : > { %p953_p4 = pnand %p951_p0, %p922_p2 }
  0x3e   : > { %p958_p5 = por %p957_p3, %p956_p1 }
  0x3f   : > { %p954_p10 = pneg %p953_p4 }
  0x40   : > { %p960_p8 = por %p959_p7, %p958_p5 }
  0x42   : > { %p961_p9 = pnand %p960_p8, %p954_p10 }
  0x44   : > { %964 = shalt.err (!%p961_p9)
}
  0x45   : > { %s965_s0 = scalar_lea.vmem %s1225_s23, 1024  ;;  %s1057_s30 = smov [#allocation5]  }
  0x46   : > { %p966_p11 = scmp.ne.s32.totalorder %s1225_s23, %s965_s0  ;;  %s970_s29 = sshll.u32 %s1057_s30, 4  ;;  %s971_s29 = int_to_ptr.vmem [resolvable:$false] %s970_s29 }
  0x47   : > { %s972_s26 = scalar_lea.vmem %s971_s29, 2048  ;;  %p973_p6 = scmp.lt.s32.totalorder %s1225_s23, %s971_s29 }
  0x48   : > { %p968_p0 = pnand %p966_p11, %p922_p2  ;;  %p974_p1 = scmp.lt.s32.totalorder %s972_s26, %s965_s0 }
  0x4a   : > { %p969_p4 = pneg %p968_p0  ;;  %p975_p3 = por %p974_p1, %p973_p6 }
  0x4c   : > { %p976_p5 = pnand %p975_p3, %p969_p4 }
  0x4e   : > { %979 = shalt.err (!%p976_p5)
}
  0x4f   : > { %s1449_s18 = smov 256   ;;  %264 = sbr.rel (%p1217_p12) target bundleno = 767 (0x2ff), region = 44 }
  0x50   : > { %851 = dma.hbm_to_vmem [thread:$0]  (!%p1171_p13), %s1221_s13, 1024, %s1225_s23, %s240_s16, %s1449_s18, %s1055_s7, %s1056_s15  }
  0x51   : > { %s1258_s12 = sand.u32 (!%p1217_p12), 1, %s1043_s22   ;;  %p1450_p6 = scmp.ne.s32.totalorder (!%p1217_p12), %s1441_s8, 0 }
  0x52   : > { %s1261_s20 = sshll.u32 (!%p1217_p12), %s1258_s12, 6  ;;  %s267_s19 = scalar_lea.sflag (!%p1217_p12), [#allocation3], %s1258_s12 }
  0x53   : > { %s1265_s17 = scalar_lea.vmem (!%p1217_p12), [#allocation2], %s1261_s20 }
  0x56   : > { %1026 = dma.done.wait (%p1450_p6), %s267_s19, 1024  }
  0x57   : > { %1028 = vsyncadd (%p1450_p6), %s267_s19, 4294966272  ;;  %s276_s23 = scalar_lea.sflag [#allocation6], %s1258_s12  ;;  %s279_s11 = scalar_lea.vmem [#allocation5], %s1261_s20 }
  0x58   : > { %1030 = dma.done.wait (%p1450_p6), %s276_s23, 1024  }
  0x59   : > { %1032 = vsyncadd (%p1450_p6), %s276_s23, 4294966272  ;;  %v325_v0 = vld [vmem:[%s279_s11] sm:$0xff]  ;;  %s1058_s13 = smov 64   ;;  %v326_v2 = vld [vmem:[%s279_s11 + $0x8] sm:$0xff]  ;;  %vm365_vm0 = vcmask 523264   ;;  %s312_s0 = scalar_lea.vmem [#allocation7], %s1261_s20 }
  0x5a   : > { %v329_v1 = vld [vmem:[%s279_s11 + $0x20] sm:$0xff]  ;;  %341 = vrot.lane.b32.xlu0 %v325_v0, %s1058_s13  ;;  %v330_v3 = vld [vmem:[%s279_s11 + $0x28] sm:$0xff]  ;;  %v327_v4 = vld [vmem:[%s279_s11 + $0x10] sm:$0xff]  ;;  %s786_s30 = sshll.u32 %s1118_s25, 10  ;;  %s655_s29 = sshll.u32 %s312_s0, 4  ;;  %s1378_s29 = int_to_ptr.vmem [resolvable:$true] %s655_s29 }
  0x5b   : > { %349 = vrot.lane.b32.xlu1 %v329_v1, %s1058_s13  ;;  %v328_v5 = vld [vmem:[%s279_s11 + $0x18] sm:$0xff]  ;;  %v331_v6 = vld [vmem:[%s279_s11 + $0x30] sm:$0xff]  ;;  %v317_v8 = vld [vmem:[%s1265_s17] sm:$0xff]  ;;  %s1376_s26 = scalar_lea.hbm %s1431_s6, %s786_s30  ;;  %s642_s18 = scalar_lea.sflag [#allocation4], %s1258_s12 }
  0x5c   : > { %v332_v7 = vld [vmem:[%s279_s11 + $0x38] sm:$0xff]  ;;  %v321_v11 = vld [vmem:[%s1265_s17 + $0x20] sm:$0xff]  ;;  %v318_v13 = vld [vmem:[%s1265_s17 + $0x8] sm:$0xff]  ;;  %s981_s19 = scalar_lea.vmem %s1378_s29, 1024  ;;  %p1451_p2 = scmp.ne.s32.totalorder %s1442_s9, 0 }
  0x5d   : > { %v322_v17 = vld [vmem:[%s1265_s17 + $0x28] sm:$0xff]  ;;  %v319_v19 = vld [vmem:[%s1265_s17 + $0x10] sm:$0xff]  ;;  %v320_v23 = vld [vmem:[%s1265_s17 + $0x18] sm:$0xff]  ;;  %p982_p13 = scmp.ne.s32.totalorder %s1378_s29, %s981_s19 }
  0x5e   : > { %343 = vrot.lane.b32.xlu0 %v326_v2, %s1058_s13  ;;  %v323_v25 = vld [vmem:[%s1265_s17 + $0x30] sm:$0xff]  ;;  %v324_v29 = vld [vmem:[%s1265_s17 + $0x38] sm:$0xff]  ;;  %v896_v0 = vld [vmem:[%s1429_s4] sm:$0xff]   ;;  %s1059_s17 = smov [#allocation7]  }
  0x5f   : > { %351 = vrot.lane.b32.xlu1 %v330_v3, %s1058_s13  ;;  %799 = vmatprep.subr.bf16.mxu0 %v896_v0  ;;  %v897_v1 = vld [vmem:[%s1429_s4 + $0x8] sm:$0xff]   ;;  %v898_v2 = vld [vmem:[%s1429_s4 + $0x10] sm:$0xff]   ;;  %v899_v3 = vld [vmem:[%s1429_s4 + $0x18] sm:$0xff]   ;;  %p983_p12 = pnand %p982_p13, %p1451_p2  ;;  %s985_s23 = sshll.u32 %s1059_s17, 4  ;;  %s986_s23 = int_to_ptr.vmem [resolvable:$false] %s985_s23 }
  0x60   : > { %823 = vmatprep.subr.bf16.mxu1 %v896_v0  ;;  %800 = vmatpush3.bf16.msra.mxu0 %v896_v0  ;;  %s987_s11 = scalar_lea.vmem %s986_s23, 2048  ;;  %p988_p7 = scmp.lt.s32.totalorder %s1378_s29, %s986_s23 }
  0x61   : > { %831 = vmatpush3.bf16.msra.mxu1 %v896_v0  ;;  %801 = vmatprep.subr.bf16.mxu0 %v897_v1  ;;  %p984_p10 = pneg %p983_p12  ;;  %p989_p8 = scmp.lt.s32.totalorder %s987_s11, %s981_s19 }
  0x62   : > { %345 = vrot.lane.b32.xlu0 %v327_v4, %s1058_s13  ;;  %824 = vmatprep.subr.bf16.mxu1 %v897_v1  ;;  %v900_v4 = vld [vmem:[%s1429_s4 + $0x20] sm:$0xff]  }
  0x63   : > { %347 = vrot.lane.b32.xlu1 %v328_v5, %s1058_s13  ;;  %v901_v5 = vld [vmem:[%s1429_s4 + $0x28] sm:$0xff]   ;;  %p990_p9 = por %p989_p8, %p988_p7 }
  0x64   : > { %802 = vmatpush3.bf16.msra.mxu0 %v897_v1 }
  0x65   : > { %832 = vmatpush3.bf16.msra.mxu1 %v897_v1  ;;  %803 = vmatprep.subr.bf16.mxu0 %v898_v2  ;;  %p991_p11 = pnand %p990_p9, %p984_p10 }
  0x66   : > { %353 = vrot.lane.b32.xlu0 %v331_v6, %s1058_s13  ;;  %825 = vmatprep.subr.bf16.mxu1 %v898_v2  ;;  %v902_v6 = vld [vmem:[%s1429_s4 + $0x30] sm:$0xff]  }
  0x67   : > { %355 = vrot.lane.b32.xlu1 %v332_v7, %s1058_s13  ;;  %v903_v7 = vld [vmem:[%s1429_s4 + $0x38] sm:$0xff]  }
  0x68   : > { %804 = vmatpush3.bf16.msra.mxu0 %v898_v2 }
  0x69   : > { %833 = vmatpush3.bf16.msra.mxu1 %v898_v2  ;;  %805 = vmatprep.subr.bf16.mxu0 %v899_v3 }
  0x6a   : > { %826 = vmatprep.subr.bf16.mxu1 %v899_v3 }
  0x6c   : > { %806 = vmatpush3.bf16.msra.mxu0 %v899_v3 }
  0x6d   : > { %834 = vmatpush3.bf16.msra.mxu1 %v899_v3  ;;  %807 = vmatprep.subr.bf16.mxu0 %v900_v4 }
  0x6e   : > { %827 = vmatprep.subr.bf16.mxu1 %v900_v4 }
  0x70   : > { %808 = vmatpush3.bf16.msra.mxu0 %v900_v4 }
  0x71   : > { %835 = vmatpush3.bf16.msra.mxu1 %v900_v4  ;;  %809 = vmatprep.subr.bf16.mxu0 %v901_v5 }
  0x72   : > { %828 = vmatprep.subr.bf16.mxu1 %v901_v5 }
  0x74   : > { %810 = vmatpush3.bf16.msra.mxu0 %v901_v5 }
  0x75   : > { %836 = vmatpush3.bf16.msra.mxu1 %v901_v5  ;;  %811 = vmatprep.subr.bf16.mxu0 %v902_v6 }
  0x76   : > { %829 = vmatprep.subr.bf16.mxu1 %v902_v6 }
  0x78   : > { %812 = vmatpush3.bf16.msra.mxu0 %v902_v6 }
  0x79   : > { %837 = vmatpush3.bf16.msra.mxu1 %v902_v6  ;;  %813 = vmatprep.subr.bf16.mxu0 %v903_v7 }
  0x7a   : > { %830 = vmatprep.subr.bf16.mxu1 %v903_v7 }
  0x7c   : > { %814 = vmatpush3.bf16.msra.mxu0 %v903_v7 }
  0x7d   : > { %838 = vmatpush3.bf16.msra.mxu1 %v903_v7 }
  0xcc   : > { %v342_v9 = vpop.permute.xlu0 %341 }
  0xcd   : > { %v350_v10 = vpop.permute.xlu1 %349  ;;  %v366_v12 = vsel %vm365_vm0, %v317_v8, %v342_v9 }
  0xce   : > { %374 = vadd.xlane.f32.xlu0 %v366_v12  ;;  %v370_v14 = vsel %vm365_vm0, %v321_v11, %v350_v10 }
  0xd0   : > { %v344_v15 = vpop.permute.xlu0 %343 }
  0xd1   : > { %v352_v16 = vpop.permute.xlu1 %351  ;;  %v367_v18 = vsel %vm365_vm0, %v318_v13, %v344_v15 }
  0xd2   : > { %376 = vadd.xlane.f32.xlu1 %v367_v18  ;;  %382 = vadd.xlane.f32.xlu0 %v370_v14  ;;  %v371_v20 = vsel %vm365_vm0, %v322_v17, %v352_v16 }
  0xd4   : > { %v346_v21 = vpop.permute.xlu0 %345 }
  0xd5   : > { %v348_v22 = vpop.permute.xlu1 %347  ;;  %v368_v24 = vsel %vm365_vm0, %v319_v19, %v346_v21 }
  0xd6   : > { %378 = vadd.xlane.f32.xlu1 %v368_v24  ;;  %384 = vadd.xlane.f32.xlu0 %v371_v20  ;;  %v369_v26 = vsel %vm365_vm0, %v320_v23, %v348_v22 }
  0xd8   : > { %v354_v27 = vpop.permute.xlu0 %353 }
  0xd9   : > { %v356_v28 = vpop.permute.xlu1 %355  ;;  %v372_v30 = vsel %vm365_vm0, %v323_v25, %v354_v27 }
  0xda   : > { %386 = vadd.xlane.f32.xlu1 %v372_v30  ;;  %380 = vadd.xlane.f32.xlu0 %v369_v26  ;;  %v373_v31 = vsel %vm365_vm0, %v324_v29, %v356_v28 }
  0xde   : > { %388 = vadd.xlane.f32.xlu0 %v373_v31 }
 0x15b   : > { %v375_v32 = vpop.xlane.xlu0 %374 }
 0x15c   : > { %v391_v33 = vmul.f32 0.0078125, %v375_v32 }
 0x15e   : > { %v1293_v34 = vsub.f32 %v366_v12, %v391_v33  ;;  %v767_v33 = vld [vmem:[%s1427_s2] ss:$0 sm:$0xff] }
 0x15f   : > { %v377_v35 = vpop.xlane.xlu1 %376  ;;  %v383_v36 = vpop.xlane.xlu0 %382 }
 0x160   : > { %v392_v37 = vmul.f32 0.0078125, %v377_v35  ;;  %v395_v38 = vmul.f32 0.0078125, %v383_v36  ;;  %v407_v39 = vmul.f32 %v1293_v34, %v1293_v34 }
 0x162   : > { %v1297_v40 = vsub.f32 %v367_v18, %v392_v37  ;;  %v1299_v41 = vsub.f32 %v370_v14, %v395_v38  ;;  %415 = vadd.xlane.f32.xlu1 %v407_v39 }
 0x163   : > { %v379_v42 = vpop.xlane.xlu1 %378  ;;  %v385_v43 = vpop.xlane.xlu0 %384 }
 0x164   : > { %v393_v44 = vmul.f32 0.0078125, %v379_v42  ;;  %v396_v45 = vmul.f32 0.0078125, %v385_v43  ;;  %v408_v46 = vmul.f32 %v1297_v40, %v1297_v40  ;;  %v411_v47 = vmul.f32 %v1299_v41, %v1299_v41  ;;  %v768_v42 = vld [vmem:[%s1428_s3] ss:$0 sm:$0xff] }
 0x166   : > { %v1305_v48 = vsub.f32 %v368_v24, %v393_v44  ;;  %v1307_v49 = vsub.f32 %v371_v20, %v396_v45  ;;  %417 = vadd.xlane.f32.xlu0 %v408_v46  ;;  %423 = vadd.xlane.f32.xlu1 %v411_v47 }
 0x167   : > { %v387_v50 = vpop.xlane.xlu1 %386  ;;  %v381_v51 = vpop.xlane.xlu0 %380 }
 0x168   : > { %v397_v52 = vmul.f32 0.0078125, %v387_v50  ;;  %v394_v53 = vmul.f32 0.0078125, %v381_v51  ;;  %v409_v54 = vmul.f32 %v1305_v48, %v1305_v48  ;;  %v412_v55 = vmul.f32 %v1307_v49, %v1307_v49 }
 0x16a   : > { %v1313_v56 = vsub.f32 %v372_v30, %v397_v52  ;;  %v1315_v57 = vsub.f32 %v369_v26, %v394_v53  ;;  %419 = vadd.xlane.f32.xlu1 %v409_v54  ;;  %425 = vadd.xlane.f32.xlu0 %v412_v55 }
 0x16b   : > { %v389_v58 = vpop.xlane.xlu0 %388 }
 0x16c   : > { %v398_v59 = vmul.f32 0.0078125, %v389_v58  ;;  %v413_v60 = vmul.f32 %v1313_v56, %v1313_v56  ;;  %v410_v61 = vmul.f32 %v1315_v57, %v1315_v57 }
 0x16e   : > { %v1321_v62 = vsub.f32 %v373_v31, %v398_v59  ;;  %427 = vadd.xlane.f32.xlu1 %v413_v60  ;;  %421 = vadd.xlane.f32.xlu0 %v410_v61 }
 0x170   : > { %v414_v63 = vmul.f32 %v1321_v62, %v1321_v62 }
 0x172   : > { %429 = vadd.xlane.f32.xlu0 %v414_v63 }
 0x1ef   : > { %v416_v8 = vpop.xlane.xlu1 %415 }
 0x1f0   : > { %v431_v9 = vmul.f32 0.0078125, %v416_v8 }
 0x1f2   : > { %v439_v10 = vadd.f32 1e-05, %v431_v9 }
 0x1f3   : > { %v424_v11 = vpop.xlane.xlu1 %423  ;;  %v418_v12 = vpop.xlane.xlu0 %417 }
 0x1f4   : > { %904 = vrsqrt.f32 %v439_v10  ;;  %v435_v13 = vmul.f32 0.0078125, %v424_v11  ;;  %v432_v14 = vmul.f32 0.0078125, %v418_v12 }
 0x1f6   : > { %v443_v15 = vadd.f32 1e-05, %v435_v13  ;;  %v440_v16 = vadd.f32 1e-05, %v432_v14 }
 0x1f7   : > { %v420_v17 = vpop.xlane.xlu1 %419  ;;  %v426_v18 = vpop.xlane.xlu0 %425 }
 0x1f8   : > { %906 = vrsqrt.f32 %v443_v15  ;;  %v433_v19 = vmul.f32 0.0078125, %v420_v17  ;;  %v436_v20 = vmul.f32 0.0078125, %v426_v18 }
 0x1f9   : > { %908 = vrsqrt.f32 %v440_v16 }
 0x1fa   : > { %v441_v21 = vadd.f32 1e-05, %v433_v19  ;;  %v444_v22 = vadd.f32 1e-05, %v436_v20 }
 0x1fb   : > { %v428_v23 = vpop.xlane.xlu1 %427  ;;  %v422_v24 = vpop.xlane.xlu0 %421 }
 0x1fc   : > { %910 = vrsqrt.f32 %v441_v21  ;;  %v437_v25 = vmul.f32 0.0078125, %v428_v23  ;;  %v434_v26 = vmul.f32 0.0078125, %v422_v24 }
 0x1fd   : > { %912 = vrsqrt.f32 %v444_v22 }
 0x1fe   : > { %v905_v27 = vpop.eup %904  ;;  %v445_v28 = vadd.f32 1e-05, %v437_v25  ;;  %v442_v29 = vadd.f32 1e-05, %v434_v26 }
 0x1ff   : > { %v430_v30 = vpop.xlane.xlu0 %429  ;;  %v455_v31 = vmul.f32 %v905_v27, %v1293_v34 }
 0x200   : > { %914 = vrsqrt.f32 %v445_v28  ;;  %v438_v32 = vmul.f32 0.0078125, %v430_v30 }
 0x201   : > { %916 = vrsqrt.f32 %v442_v29  ;;  %v470_v38 = vmul.f32 %v767_v33, %v455_v31 }
 0x202   : > { %v907_v35 = vpop.eup %906  ;;  %v446_v36 = vadd.f32 1e-05, %v438_v32 }
 0x203   : > { %v909_v37 = vpop.eup %908  ;;  %v459_v34 = vmul.f32 %v907_v35, %v1299_v41  ;;  %v485_v46 = vadd.f32 %v768_v42, %v470_v38 }
 0x204   : > { %918 = vrsqrt.f32 %v446_v36  ;;  %v456_v39 = vmul.f32 %v909_v37, %v1297_v40 }
 0x205   : > { %v474_v51 = vmul.f32 %v767_v33, %v459_v34 }
 0x206   : > { %v911_v43 = vpop.eup %910  ;;  %v471_v44 = vmul.f32 %v767_v33, %v456_v39 }
 0x207   : > { %v913_v45 = vpop.eup %912  ;;  %v457_v52 = vmul.f32 %v911_v43, %v1305_v48  ;;  %v489_v59 = vadd.f32 %v768_v42, %v474_v51 }
 0x208   : > { %v486_v47 = vadd.f32 %v768_v42, %v471_v44  ;;  %v460_v50 = vmul.f32 %v913_v45, %v1307_v49 }
 0x209   : > { %v472_v61 = vmul.f32 %v767_v33, %v457_v52 }
 0x20a   : > { %v915_v53 = vpop.eup %914  ;;  %v493_v54 = vpack.c.bf16 %v486_v47, %v485_v46  ;;  %v475_v55 = vmul.f32 %v767_v33, %v460_v50 }
 0x20b   : > { %v917_v40 = vpop.eup %916  ;;  %v461_v58 = vmul.f32 %v915_v53, %v1313_v56  ;;  %v487_v48 = vadd.f32 %v768_v42, %v472_v61 }
 0x20c   : > { %815 = vmatprep.mubr.bf16.mxu0 %v493_v54  ;;  %v490_v60 = vadd.f32 %v768_v42, %v475_v55  ;;  %v458_v41 = vmul.f32 %v917_v40, %v1315_v57  ;;  %v769_v57 = vld [vmem:[%s1430_s5] ss:$0 sm:$0xff] }
 0x20d   : > { %v476_v2 = vmul.f32 %v767_v33, %v461_v58 }
 0x20e   : > { %v919_v63 = vpop.eup %918  ;;  %v495_v0 = vpack.c.bf16 %v490_v60, %v489_v59  ;;  %v473_v1 = vmul.f32 %v767_v33, %v458_v41 }
 0x20f   : > { %v462_v49 = vmul.f32 %v919_v63, %v1321_v62  ;;  %v491_v6 = vadd.f32 %v768_v42, %v476_v2 }
 0x210   : > { %819 = vmatprep.mubr.bf16.mxu1 %v495_v0  ;;  %v488_v3 = vadd.f32 %v768_v42, %v473_v1 }
 0x211   : > { %v477_v4 = vmul.f32 %v767_v33, %v462_v49 }
 0x212   : > { %v494_v5 = vpack.c.bf16 %v488_v3, %v487_v48 }
 0x213   : > { %v492_v56 = vadd.f32 %v768_v42, %v477_v4 }
 0x214   : > { %816 = vmatmul.mubr.bf16.vlgmr.msra.gmra.mrb[0].mxu0 %v494_v5 }
 0x215   : > { %v496_v7 = vpack.c.bf16 %v492_v56, %v491_v6 }
 0x217   : > { %820 = vmatmul.mubr.bf16.vlgmr.msra.gmra.mrb[0].mxu1 %v496_v7 }
 0x2e7   : > { %v817_v8 = vpop.f32.mrb[0].mxu0 }
 0x2e8   : > { %v611_v9 = vadd.f32 %v817_v8, %v769_v57  ;;  %v602_v62 = vpop.f32.mrb[1].mxu0 }
 0x2e9   : > { %v603_v10 = vadd.f32 %v769_v57, %v602_v62  ;;  %v818_v11 = vpop.f32.mrb[2].mxu0 }
 0x2ea   : > { %635 = vst.msk [vmem:[%s312_s0 + $0x10] sm:$0xff] %vm365_vm0, %v611_v9  ;;  %v614_v12 = vadd.f32 %v818_v11, %v769_v57  ;;  %v605_v13 = vpop.f32.mrb[3].mxu0  ;;  %v821_v14 = vpop.f32.mrb[0].mxu1 }
 0x2eb   : > { %633 = vst.msk [vmem:[%s312_s0] sm:$0xff] %vm365_vm0, %v603_v10  ;;  %v606_v15 = vadd.f32 %v769_v57, %v605_v13  ;;  %v627_v16 = vadd.f32 %v821_v14, %v769_v57  ;;  %v618_v17 = vpop.f32.mrb[1].mxu1 }
 0x2ec   : > { %636 = vst.msk [vmem:[%s312_s0 + $0x18] sm:$0xff] %vm365_vm0, %v614_v12  ;;  %v619_v18 = vadd.f32 %v769_v57, %v618_v17  ;;  %v822_v19 = vpop.f32.mrb[2].mxu1 }
 0x2ed   : > { %634 = vst.msk [vmem:[%s312_s0 + $0x8] sm:$0xff] %vm365_vm0, %v606_v15  ;;  %639 = vst.msk [vmem:[%s312_s0 + $0x30] sm:$0xff] %vm365_vm0, %v627_v16  ;;  %v630_v20 = vadd.f32 %v822_v19, %v769_v57  ;;  %v621_v21 = vpop.f32.mrb[3].mxu1 }
 0x2ee   : > { %637 = vst.msk [vmem:[%s312_s0 + $0x20] sm:$0xff] %vm365_vm0, %v619_v18  ;;  %v622_v22 = vadd.f32 %v769_v57, %v621_v21 }
 0x2ef   : > { %640 = vst.msk [vmem:[%s312_s0 + $0x38] sm:$0xff] %vm365_vm0, %v630_v20 }
 0x2f0   : > { %638 = vst.msk [vmem:[%s312_s0 + $0x28] sm:$0xff] %vm365_vm0, %v622_v22 }
 0x2f1   : > { %994 = shalt.err (!%p991_p11)
}
 0x2f2   : > { %s995_s13 = scalar_lea.hbm %s1376_s26, 1024  ;;  %s999_s15 = scalar_lea.hbm %s1431_s6, 2048 }
 0x2f3   : > { %p996_p0 = scmp.ne.s32.totalorder %s1376_s26, %s995_s13  ;;  %p1000_p3 = scmp.lt.u32.totalorder %s1376_s26, %s1431_s6 }
 0x2f4   : > { %p1001_p5 = scmp.lt.u32.totalorder %s999_s15, %s995_s13  ;;  %p1003_p13 = scmp.lt.u32.totalorder %s995_s13, %s1376_s26 }
 0x2f5   : > { %p997_p4 = pnand %p996_p0, %p1451_p2 }
 0x2f6   : > { %p1002_p6 = por %p1001_p5, %p1000_p3 }
 0x2f7   : > { %p998_p1 = pneg %p997_p4 }
 0x2f8   : > { %p1004_p12 = por %p1003_p13, %p1002_p6 }
 0x2fa   : > { %p1005_p10 = pnand %p1004_p12, %p998_p1 }
 0x2fc   : > { %1008 = shalt.err (!%p1005_p10)
}
 0x2fd   : > { %s1060_s28 = smov 128   ;;  %s1061_s0 = smov 8  }
 0x2fe   : > { %843 = dma.vmem_to_hbm [thread:$0]  (%p1451_p2), %s1378_s29, 1024, %s1376_s26, %s642_s18, %s1060_s28, %s1060_s28, %s1061_s0  }
 0x2ff PF: > { %s670_s30 = sand.u32 1, %s1039_s21   ;;  %p1452_p7 = scmp.ne.s32.totalorder %s1443_s10, 0 }
 0x300   : > { %p1453_p8 = scmp.ge.s32.totalorder %s1051_s24, 2  ;;  %s671_s20 = scalar_lea.sflag [#allocation4], %s670_s30 }
 0x302   : > { %p853_p9 = pnand %p1453_p8, %p1452_p7 }
 0x304   : > { %1034 = dma.done.wait (!%p853_p9), %s671_s20, 1024  }
 0x305   : > { %1036 = vsyncadd (!%p853_p9), %s671_s20, 4294966272  ;;  %s1454_s25 = sld [smem:[#allocation11_spill]]  ;;  %s1455_s23 = sld [smem:[#allocation12_spill]] }
 0x306   : > { %p22_p11 = scmp.ge.s32.totalorder %s1122_s27, 4   ;;  %s1456_s21 = smov %s1043_s22 }
 0x307   : > { %s1458_s24 = smov %s1122_s27 }
 0x308   :  { %24 = sbr.rel (!%p22_p11) target bundleno = 9 (0x9), region = 102 }
 0x30b   : > { %s1457_s22 = smov %s1454_s25 }
 0x30f   :  { %676 = vsyncpa [#allocation3], 1 }
 0x310   :  { %678 = vsyncpa [#allocation3 + $0x1], 1 }
 0x311   :  { %679 = vsyncpa [#allocation6], 1 }
 0x312   :  { %681 = vsyncpa [#allocation6 + $0x1], 1 }
 0x313   :  { %682 = vsyncpa [#allocation4], 1 }
 0x314   :  { %684 = vsyncpa [#allocation4 + $0x1], 1 }

</bundles_post_ra>
